<compile_context>
chip_gen: v7x
topology: tpu7x:2x2x1
jax: 0.10.0
libtpu: 0.0.40
codegen_flags: <defaults>
</compile_context>

<pallas_src>
import functools

import jax
import jax.numpy as jnp
from jax import lax
from jax.experimental import pallas as pl
from jax.experimental.pallas import tpu as pltpu

KSIZE = 13
PAD = KSIZE // 2
LANES = 128


def _stage_padded(dst_ref, src_ref, H, W, Hp, Wp, Cc):
    """Zero the halo border of dst and copy the (H, W, Cc) tile into the interior."""
    zrow = jnp.zeros((PAD, Wp, Cc), dst_ref.dtype)
    dst_ref[0:PAD, :, :] = zrow
    dst_ref[PAD + H:Hp, :, :] = zrow
    zcol = jnp.zeros((H, PAD, Cc), dst_ref.dtype)
    dst_ref[PAD:PAD + H, 0:PAD, :] = zcol
    dst_ref[PAD:PAD + H, PAD + W:Wp, :] = zcol
    dst_ref[PAD:PAD + H, PAD:PAD + W, :] = src_ref[...]


def simple_gate_kernel(x1_ref, x2_ref, w1_ref, w2_ref, o_ref,
                       x1p_ref, x2p_ref, *, H, W, Cc, Hr, inv_scale):
    # x1_ref/x2_ref: (H, W, Cc) channels-last activation tiles (first / second half)
    # w1_ref/w2_ref: (K, K, Cc) depthwise filters, channels on lanes
    # o_ref:         (H, W, Cc) gated output
    # x1p_ref/x2p_ref: (Hp, Wp, Cc) VMEM scratch, zero halo built in-kernel
    Hp, Wp = H + 2 * PAD, W + 2 * PAD
    _stage_padded(x1p_ref, x1_ref, H, W, Hp, Wp, Cc)
    _stage_padded(x2p_ref, x2_ref, H, W, Hp, Wp, Cc)

    n_row_blocks = H // Hr

    @pl.loop(0, n_row_blocks)
    def _(rb):
        r0 = pl.multiple_of(rb * Hr, Hr)

        def kh_body(kh, carry):
            acc1, acc2 = carry
            w1_row = w1_ref[kh].astype(jnp.float32)   # (K, Cc), lanes = channels
            w2_row = w2_ref[kh].astype(jnp.float32)
            r = r0 + kh
            for kw in range(KSIZE):                   # kw taps unrolled
                x1s = x1p_ref[pl.ds(r, Hr), pl.ds(kw, W), :].astype(jnp.float32)
                x2s = x2p_ref[pl.ds(r, Hr), pl.ds(kw, W), :].astype(jnp.float32)
                acc1 = acc1 + x1s * w1_row[kw]
                acc2 = acc2 + x2s * w2_row[kw]
            return acc1, acc2

        acc0 = jnp.zeros((Hr, W, Cc), jnp.float32)
        acc1, acc2 = lax.fori_loop(0, KSIZE, kh_body, (acc0, acc0))

        # SimpleGate: x1 * (x2 / scale)
        o_ref[pl.ds(r0, Hr), :, :] = (acc1 * (acc2 * inv_scale)).astype(o_ref.dtype)


def _pick_row_block(H, W, Cc, budget_elems=16 * 1024):
    """Row-block so the two f32 accumulators stay within ~16 vregs (no spills)."""
    cap = max(1, budget_elems // (2 * W * Cc))
    hr = min(H, cap)
    while H % hr:
        hr -= 1
    return hr


def simple_gate_t(x, w, *, scale, scale_factor=1.0):
    """SimpleGateT forward.

    x: (B, C, H, W); w: (C, K, K) depthwise Conv2d weight (groups=C, bias=False).
    Returns (B, C//2, H, W) = conv(x)[:, :C//2] * (conv(x)[:, C//2:] / scale).
    """
    if scale_factor != 1.0:
        # TODO(synk): adaptive_avg_pool2d + bilinear interpolate path.
        raise NotImplementedError("scale_factor != 1.0 is not supported")

    B, C, H, W = x.shape
    assert C % 2 == 0
    Ch = C // 2
    K = KSIZE
    Hp, Wp = H + 2 * PAD, W + 2 * PAD

    # Channel chunk on the 128-lane axis (full half if it is not 128-divisible).
    Cc = LANES if Ch % LANES == 0 else Ch
    n_chunks = Ch // Cc
    Hr = _pick_row_block(H, W, Cc)
    inv_scale = float(1.0 / scale)

    # Lane-dense channels-last layout (layout plumbing; a real pipeline would
    # keep activations NHWC end-to-end and skip these transposes).
    x_nhwc = jnp.transpose(x, (0, 2, 3, 1))            # (B, H, W, C)
    x1 = x_nhwc[..., :Ch]
    x2 = x_nhwc[..., Ch:]
    w_t = jnp.transpose(w, (1, 2, 0))                  # (K, K, C)
    w1 = w_t[..., :Ch]
    w2 = w_t[..., Ch:]

    kernel = functools.partial(simple_gate_kernel, H=H, W=W, Cc=Cc, Hr=Hr,
                               inv_scale=inv_scale)

    out_nhwc = pl.pallas_call(
        kernel,
        out_shape=jax.ShapeDtypeStruct((B, H, W, Ch), x.dtype),
        grid_spec=pltpu.PrefetchScalarGridSpec(
            num_scalar_prefetch=0,
            grid=(B, n_chunks),
            in_specs=[
                pl.BlockSpec((None, H, W, Cc), lambda b, c: (b, 0, 0, c)),
                pl.BlockSpec((None, H, W, Cc), lambda b, c: (b, 0, 0, c)),
                pl.BlockSpec((K, K, Cc), lambda b, c: (0, 0, c)),
                pl.BlockSpec((K, K, Cc), lambda b, c: (0, 0, c)),
            ],
            out_specs=pl.BlockSpec((None, H, W, Cc), lambda b, c: (b, 0, 0, c)),
            scratch_shapes=[
                pltpu.VMEM((Hp, Wp, Cc), x.dtype),
                pltpu.VMEM((Hp, Wp, Cc), x.dtype),
            ],
        ),
        compiler_params=pltpu.CompilerParams(
            dimension_semantics=("parallel", "parallel")),
    )(x1, x2, w1, w2)

    return jnp.transpose(out_nhwc, (0, 3, 1, 2))       # back to NCHW


def reference(x, w, scale):
    """Pure-JAX reference matching the PyTorch forward (scale_factor=1.0)."""
    C = x.shape[1]
    y = lax.conv_general_dilated(
        x, w[:, None, :, :],
        window_strides=(1, 1),
        padding=[(PAD, PAD), (PAD, PAD)],
        dimension_numbers=("NCHW", "OIHW", "NCHW"),
        feature_group_count=C)
    x1, x2 = jnp.split(y, 2, axis=1)
    return x1 * (x2 / scale)


if __name__ == "__main__":
    # dim=256 so each channel half (128) exactly fills the 128-lane axis.
    B, C, H, W = 2, 256, 16, 16
    dim = C
    scale = (dim / 2) ** (-0.5)

    key = jax.random.PRNGKey(0)
    kx, kw = jax.random.split(key)
    x = jax.random.normal(kx, (B, C, H, W), dtype=jnp.float32)
    # Deterministic synthetic depthwise weights (Conv2d(dim, dim, 13, groups=dim, bias=False))
    w = jax.random.normal(kw, (C, KSIZE, KSIZE), dtype=jnp.float32) * 0.05

    out = jax.block_until_ready(simple_gate_t(x, w, scale=scale))
    ref = reference(x, w, scale)

    assert out.shape == (B, C // 2, H, W), out.shape
    err = float(jnp.max(jnp.abs(out - ref)))
    assert jnp.allclose(out, ref, atol=1e-4, rtol=1e-4), err

    print("KERNEL_OK")
</pallas_src>

<mosaic_0001>
module attributes {stable_mosaic.version = 11 : i64} {
  func.func @simple_gate_kernel(%arg0: i32, %arg1: i32, %arg2: memref<1x16x16x128xf32, #tpu.memory_space<vmem>>, %arg3: memref<1x16x16x128xf32, #tpu.memory_space<vmem>>, %arg4: memref<13x13x128xf32, #tpu.memory_space<vmem>>, %arg5: memref<13x13x128xf32, #tpu.memory_space<vmem>>, %arg6: memref<1x16x16x128xf32, #tpu.memory_space<vmem>>, %arg7: memref<28x28x128xf32, #tpu.memory_space<vmem>>, %arg8: memref<28x28x128xf32, #tpu.memory_space<vmem>>) attributes {dimension_semantics = [#tpu.dimension_semantics<parallel>, #tpu.dimension_semantics<parallel>], iteration_bounds = array<i64: 2, 1>, scalar_prefetch = 0 : i64, scratch_operands = 2 : i64, tpu.core_type = #tpu.core_type<tc>, window_params = [{transform_indices = @transform_0, window_bounds = array<i64: 1, 16, 16, 128>}, {transform_indices = @transform_1, window_bounds = array<i64: 1, 16, 16, 128>}, {transform_indices = @transform_2, window_bounds = array<i64: 13, 13, 128>}, {transform_indices = @transform_3, window_bounds = array<i64: 13, 13, 128>}, {transform_indices = @transform_4, window_bounds = array<i64: 1, 16, 16, 128>}]} {
    %cst = arith.constant 0.000000e+00 : f32
    %0 = vector.broadcast %cst : f32 to vector<6x28x128xf32>
    %c0 = arith.constant 0 : index
    %c0_0 = arith.constant 0 : index
    %c0_1 = arith.constant 0 : index
    %1 = vector.load %arg7[%c0, %c0_0, %c0_1] : memref<28x28x128xf32, #tpu.memory_space<vmem>>, vector<6x28x128xf32>
    tpu.vector_store %arg7[%c0, %c0_0, %c0_1], %0 {strides = array<i32>} : memref<28x28x128xf32, #tpu.memory_space<vmem>>, vector<6x28x128xf32>,
    %c22 = arith.constant 22 : index
    %c0_2 = arith.constant 0 : index
    %c0_3 = arith.constant 0 : index
    %2 = vector.load %arg7[%c22, %c0_2, %c0_3] : memref<28x28x128xf32, #tpu.memory_space<vmem>>, vector<6x28x128xf32>
    tpu.vector_store %arg7[%c22, %c0_2, %c0_3], %0 {strides = array<i32>} : memref<28x28x128xf32, #tpu.memory_space<vmem>>, vector<6x28x128xf32>,
    %cst_4 = arith.constant 0.000000e+00 : f32
    %3 = vector.broadcast %cst_4 : f32 to vector<16x6x128xf32>
    %c6 = arith.constant 6 : index
    %c0_5 = arith.constant 0 : index
    %c0_6 = arith.constant 0 : index
    %4 = vector.load %arg7[%c6, %c0_5, %c0_6] : memref<28x28x128xf32, #tpu.memory_space<vmem>>, vector<16x6x128xf32>
    tpu.vector_store %arg7[%c6, %c0_5, %c0_6], %3 {strides = array<i32>} : memref<28x28x128xf32, #tpu.memory_space<vmem>>, vector<16x6x128xf32>,
    %c6_7 = arith.constant 6 : index
    %c22_8 = arith.constant 22 : index
    %c0_9 = arith.constant 0 : index
    %5 = vector.load %arg7[%c6_7, %c22_8, %c0_9] : memref<28x28x128xf32, #tpu.memory_space<vmem>>, vector<16x6x128xf32>
    tpu.vector_store %arg7[%c6_7, %c22_8, %c0_9], %3 {strides = array<i32>} : memref<28x28x128xf32, #tpu.memory_space<vmem>>, vector<16x6x128xf32>,
    %c0_10 = arith.constant 0 : index
    %c0_11 = arith.constant 0 : index
    %c0_12 = arith.constant 0 : index
    %c0_13 = arith.constant 0 : index
    %6 = vector.load %arg2[%c0_10, %c0_11, %c0_12, %c0_13] : memref<1x16x16x128xf32, #tpu.memory_space<vmem>>, vector<1x16x16x128xf32>
    %7 = vector.shape_cast %6 : vector<1x16x16x128xf32> to vector<16x16x128xf32>
    %c6_14 = arith.constant 6 : index
    %c6_15 = arith.constant 6 : index
    %c0_16 = arith.constant 0 : index
    %8 = vector.load %arg7[%c6_14, %c6_15, %c0_16] : memref<28x28x128xf32, #tpu.memory_space<vmem>>, vector<16x16x128xf32>
    tpu.vector_store %arg7[%c6_14, %c6_15, %c0_16], %7 {strides = array<i32>} : memref<28x28x128xf32, #tpu.memory_space<vmem>>, vector<16x16x128xf32>,
    %cst_17 = arith.constant 0.000000e+00 : f32
    %9 = vector.broadcast %cst_17 : f32 to vector<6x28x128xf32>
    %c0_18 = arith.constant 0 : index
    %c0_19 = arith.constant 0 : index
    %c0_20 = arith.constant 0 : index
    %10 = vector.load %arg8[%c0_18, %c0_19, %c0_20] : memref<28x28x128xf32, #tpu.memory_space<vmem>>, vector<6x28x128xf32>
    tpu.vector_store %arg8[%c0_18, %c0_19, %c0_20], %9 {strides = array<i32>} : memref<28x28x128xf32, #tpu.memory_space<vmem>>, vector<6x28x128xf32>,
    %c22_21 = arith.constant 22 : index
    %c0_22 = arith.constant 0 : index
    %c0_23 = arith.constant 0 : index
    %11 = vector.load %arg8[%c22_21, %c0_22, %c0_23] : memref<28x28x128xf32, #tpu.memory_space<vmem>>, vector<6x28x128xf32>
    tpu.vector_store %arg8[%c22_21, %c0_22, %c0_23], %9 {strides = array<i32>} : memref<28x28x128xf32, #tpu.memory_space<vmem>>, vector<6x28x128xf32>,
    %cst_24 = arith.constant 0.000000e+00 : f32
    %12 = vector.broadcast %cst_24 : f32 to vector<16x6x128xf32>
    %c6_25 = arith.constant 6 : index
    %c0_26 = arith.constant 0 : index
    %c0_27 = arith.constant 0 : index
    %13 = vector.load %arg8[%c6_25, %c0_26, %c0_27] : memref<28x28x128xf32, #tpu.memory_space<vmem>>, vector<16x6x128xf32>
    tpu.vector_store %arg8[%c6_25, %c0_26, %c0_27], %12 {strides = array<i32>} : memref<28x28x128xf32, #tpu.memory_space<vmem>>, vector<16x6x128xf32>,
    %c6_28 = arith.constant 6 : index
    %c22_29 = arith.constant 22 : index
    %c0_30 = arith.constant 0 : index
    %14 = vector.load %arg8[%c6_28, %c22_29, %c0_30] : memref<28x28x128xf32, #tpu.memory_space<vmem>>, vector<16x6x128xf32>
    tpu.vector_store %arg8[%c6_28, %c22_29, %c0_30], %12 {strides = array<i32>} : memref<28x28x128xf32, #tpu.memory_space<vmem>>, vector<16x6x128xf32>,
    %c0_31 = arith.constant 0 : index
    %c0_32 = arith.constant 0 : index
    %c0_33 = arith.constant 0 : index
    %c0_34 = arith.constant 0 : index
    %15 = vector.load %arg3[%c0_31, %c0_32, %c0_33, %c0_34] : memref<1x16x16x128xf32, #tpu.memory_space<vmem>>, vector<1x16x16x128xf32>
    %16 = vector.shape_cast %15 : vector<1x16x16x128xf32> to vector<16x16x128xf32>
    %c6_35 = arith.constant 6 : index
    %c6_36 = arith.constant 6 : index
    %c0_37 = arith.constant 0 : index
    %17 = vector.load %arg8[%c6_35, %c6_36, %c0_37] : memref<28x28x128xf32, #tpu.memory_space<vmem>>, vector<16x16x128xf32>
    tpu.vector_store %arg8[%c6_35, %c6_36, %c0_37], %16 {strides = array<i32>} : memref<28x28x128xf32, #tpu.memory_space<vmem>>, vector<16x16x128xf32>,
    %c0_i32 = arith.constant 0 : i32
    %c4_i32 = arith.constant 4 : i32
    %18 = arith.addi %c0_i32, %c4_i32 : i32
    %c1_i32 = arith.constant 1 : i32
    scf.for %arg9 = %c0_i32 to %18 step %c1_i32  : i32 {
      %c1_i32_39 = arith.constant 1 : i32
      %19 = arith.muli %arg9, %c1_i32_39 : i32
      %c0_i32_40 = arith.constant 0 : i32
      %20 = arith.addi %c0_i32_40, %19 : i32
      %c4_i32_41 = arith.constant 4 : i32
      %21 = arith.muli %20, %c4_i32_41 : i32
      %22 = tpu.assume_multiple %21, 4 : i32
      %cst_42 = arith.constant 0.000000e+00 : f32
      %23 = vector.broadcast %cst_42 : f32 to vector<4x16x128xf32>
      %c0_i32_43 = arith.constant 0 : i32
      %c13_i32 = arith.constant 13 : i32
      %24 = arith.addi %c0_i32_43, %c13_i32 : i32
      %c1_i32_44 = arith.constant 1 : i32
      %25:2 = scf.for %arg10 = %c0_i32_43 to %24 step %c1_i32_44 iter_args(%arg11 = %23, %arg12 = %23) -> (vector<4x16x128xf32>, vector<4x16x128xf32>)  : i32 {
        %33 = arith.index_cast %arg10 : i32 to index
        %c0_50 = arith.constant 0 : index
        %c0_51 = arith.constant 0 : index
        %34 = vector.load %arg4[%33, %c0_50, %c0_51] : memref<13x13x128xf32, #tpu.memory_space<vmem>>, vector<1x13x128xf32>
        %35 = vector.shape_cast %34 : vector<1x13x128xf32> to vector<13x128xf32>
        %36 = arith.index_cast %arg10 : i32 to index
        %c0_52 = arith.constant 0 : index
        %c0_53 = arith.constant 0 : index
        %37 = vector.load %arg5[%36, %c0_52, %c0_53] : memref<13x13x128xf32, #tpu.memory_space<vmem>>, vector<1x13x128xf32>
        %38 = vector.shape_cast %37 : vector<1x13x128xf32> to vector<13x128xf32>
        %39 = arith.addi %22, %arg10 : i32
        %40 = arith.index_cast %39 : i32 to index
        %c0_54 = arith.constant 0 : index
        %c0_55 = arith.constant 0 : index
        %41 = vector.load %arg7[%40, %c0_54, %c0_55] : memref<28x28x128xf32, #tpu.memory_space<vmem>>, vector<4x16x128xf32>
        %42 = arith.index_cast %39 : i32 to index
        %c0_56 = arith.constant 0 : index
        %c0_57 = arith.constant 0 : index
        %43 = vector.load %arg8[%42, %c0_56, %c0_57] : memref<28x28x128xf32, #tpu.memory_space<vmem>>, vector<4x16x128xf32>
        %44 = vector.extract_strided_slice %35 {offsets = [0, 0], sizes = [1, 128], strides = [1, 1]} : vector<13x128xf32> to vector<1x128xf32>
        %45 = vector.shape_cast %44 : vector<1x128xf32> to vector<128xf32>
        %46 = vector.shape_cast %45 : vector<128xf32> to vector<1x1x128xf32>
        %47 = vector.broadcast %46 : vector<1x1x128xf32> to vector<4x16x128xf32>
        %48 = arith.mulf %41, %47 : vector<4x16x128xf32>
        %49 = arith.addf %arg11, %48 : vector<4x16x128xf32>
        %50 = vector.extract_strided_slice %38 {offsets = [0, 0], sizes = [1, 128], strides = [1, 1]} : vector<13x128xf32> to vector<1x128xf32>
        %51 = vector.shape_cast %50 : vector<1x128xf32> to vector<128xf32>
        %52 = vector.shape_cast %51 : vector<128xf32> to vector<1x1x128xf32>
        %53 = vector.broadcast %52 : vector<1x1x128xf32> to vector<4x16x128xf32>
        %54 = arith.mulf %43, %53 : vector<4x16x128xf32>
        %55 = arith.addf %arg12, %54 : vector<4x16x128xf32>
        %56 = arith.index_cast %39 : i32 to index
        %c1 = arith.constant 1 : index
        %c0_58 = arith.constant 0 : index
        %57 = vector.load %arg7[%56, %c1, %c0_58] : memref<28x28x128xf32, #tpu.memory_space<vmem>>, vector<4x16x128xf32>
        %58 = arith.index_cast %39 : i32 to index
        %c1_59 = arith.constant 1 : index
        %c0_60 = arith.constant 0 : index
        %59 = vector.load %arg8[%58, %c1_59, %c0_60] : memref<28x28x128xf32, #tpu.memory_space<vmem>>, vector<4x16x128xf32>
        %60 = vector.extract_strided_slice %35 {offsets = [1, 0], sizes = [1, 128], strides = [1, 1]} : vector<13x128xf32> to vector<1x128xf32>
        %61 = vector.shape_cast %60 : vector<1x128xf32> to vector<128xf32>
        %62 = vector.shape_cast %61 : vector<128xf32> to vector<1x1x128xf32>
        %63 = vector.broadcast %62 : vector<1x1x128xf32> to vector<4x16x128xf32>
        %64 = arith.mulf %57, %63 : vector<4x16x128xf32>
        %65 = arith.addf %49, %64 : vector<4x16x128xf32>
        %66 = vector.extract_strided_slice %38 {offsets = [1, 0], sizes = [1, 128], strides = [1, 1]} : vector<13x128xf32> to vector<1x128xf32>
        %67 = vector.shape_cast %66 : vector<1x128xf32> to vector<128xf32>
        %68 = vector.shape_cast %67 : vector<128xf32> to vector<1x1x128xf32>
        %69 = vector.broadcast %68 : vector<1x1x128xf32> to vector<4x16x128xf32>
        %70 = arith.mulf %59, %69 : vector<4x16x128xf32>
        %71 = arith.addf %55, %70 : vector<4x16x128xf32>
        %72 = arith.index_cast %39 : i32 to index
        %c2 = arith.constant 2 : index
        %c0_61 = arith.constant 0 : index
        %73 = vector.load %arg7[%72, %c2, %c0_61] : memref<28x28x128xf32, #tpu.memory_space<vmem>>, vector<4x16x128xf32>
        %74 = arith.index_cast %39 : i32 to index
        %c2_62 = arith.constant 2 : index
        %c0_63 = arith.constant 0 : index
        %75 = vector.load %arg8[%74, %c2_62, %c0_63] : memref<28x28x128xf32, #tpu.memory_space<vmem>>, vector<4x16x128xf32>
        %76 = vector.extract_strided_slice %35 {offsets = [2, 0], sizes = [1, 128], strides = [1, 1]} : vector<13x128xf32> to vector<1x128xf32>
        %77 = vector.shape_cast %76 : vector<1x128xf32> to vector<128xf32>
        %78 = vector.shape_cast %77 : vector<128xf32> to vector<1x1x128xf32>
        %79 = vector.broadcast %78 : vector<1x1x128xf32> to vector<4x16x128xf32>
        %80 = arith.mulf %73, %79 : vector<4x16x128xf32>
        %81 = arith.addf %65, %80 : vector<4x16x128xf32>
        %82 = vector.extract_strided_slice %38 {offsets = [2, 0], sizes = [1, 128], strides = [1, 1]} : vector<13x128xf32> to vector<1x128xf32>
        %83 = vector.shape_cast %82 : vector<1x128xf32> to vector<128xf32>
        %84 = vector.shape_cast %83 : vector<128xf32> to vector<1x1x128xf32>
        %85 = vector.broadcast %84 : vector<1x1x128xf32> to vector<4x16x128xf32>
        %86 = arith.mulf %75, %85 : vector<4x16x128xf32>
        %87 = arith.addf %71, %86 : vector<4x16x128xf32>
        %88 = arith.index_cast %39 : i32 to index
        %c3 = arith.constant 3 : index
        %c0_64 = arith.constant 0 : index
        %89 = vector.load %arg7[%88, %c3, %c0_64] : memref<28x28x128xf32, #tpu.memory_space<vmem>>, vector<4x16x128xf32>
        %90 = arith.index_cast %39 : i32 to index
        %c3_65 = arith.constant 3 : index
        %c0_66 = arith.constant 0 : index
        %91 = vector.load %arg8[%90, %c3_65, %c0_66] : memref<28x28x128xf32, #tpu.memory_space<vmem>>, vector<4x16x128xf32>
        %92 = vector.extract_strided_slice %35 {offsets = [3, 0], sizes = [1, 128], strides = [1, 1]} : vector<13x128xf32> to vector<1x128xf32>
        %93 = vector.shape_cast %92 : vector<1x128xf32> to vector<128xf32>
        %94 = vector.shape_cast %93 : vector<128xf32> to vector<1x1x128xf32>
        %95 = vector.broadcast %94 : vector<1x1x128xf32> to vector<4x16x128xf32>
        %96 = arith.mulf %89, %95 : vector<4x16x128xf32>
        %97 = arith.addf %81, %96 : vector<4x16x128xf32>
        %98 = vector.extract_strided_slice %38 {offsets = [3, 0], sizes = [1, 128], strides = [1, 1]} : vector<13x128xf32> to vector<1x128xf32>
        %99 = vector.shape_cast %98 : vector<1x128xf32> to vector<128xf32>
        %100 = vector.shape_cast %99 : vector<128xf32> to vector<1x1x128xf32>
        %101 = vector.broadcast %100 : vector<1x1x128xf32> to vector<4x16x128xf32>
        %102 = arith.mulf %91, %101 : vector<4x16x128xf32>
        %103 = arith.addf %87, %102 : vector<4x16x128xf32>
        %104 = arith.index_cast %39 : i32 to index
        %c4 = arith.constant 4 : index
        %c0_67 = arith.constant 0 : index
        %105 = vector.load %arg7[%104, %c4, %c0_67] : memref<28x28x128xf32, #tpu.memory_space<vmem>>, vector<4x16x128xf32>
        %106 = arith.index_cast %39 : i32 to index
        %c4_68 = arith.constant 4 : index
        %c0_69 = arith.constant 0 : index
        %107 = vector.load %arg8[%106, %c4_68, %c0_69] : memref<28x28x128xf32, #tpu.memory_space<vmem>>, vector<4x16x128xf32>
        %108 = vector.extract_strided_slice %35 {offsets = [4, 0], sizes = [1, 128], strides = [1, 1]} : vector<13x128xf32> to vector<1x128xf32>
        %109 = vector.shape_cast %108 : vector<1x128xf32> to vector<128xf32>
        %110 = vector.shape_cast %109 : vector<128xf32> to vector<1x1x128xf32>
        %111 = vector.broadcast %110 : vector<1x1x128xf32> to vector<4x16x128xf32>
        %112 = arith.mulf %105, %111 : vector<4x16x128xf32>
        %113 = arith.addf %97, %112 : vector<4x16x128xf32>
        %114 = vector.extract_strided_slice %38 {offsets = [4, 0], sizes = [1, 128], strides = [1, 1]} : vector<13x128xf32> to vector<1x128xf32>
        %115 = vector.shape_cast %114 : vector<1x128xf32> to vector<128xf32>
        %116 = vector.shape_cast %115 : vector<128xf32> to vector<1x1x128xf32>
        %117 = vector.broadcast %116 : vector<1x1x128xf32> to vector<4x16x128xf32>
        %118 = arith.mulf %107, %117 : vector<4x16x128xf32>
        %119 = arith.addf %103, %118 : vector<4x16x128xf32>
        %120 = arith.index_cast %39 : i32 to index
        %c5 = arith.constant 5 : index
        %c0_70 = arith.constant 0 : index
        %121 = vector.load %arg7[%120, %c5, %c0_70] : memref<28x28x128xf32, #tpu.memory_space<vmem>>, vector<4x16x128xf32>
        %122 = arith.index_cast %39 : i32 to index
        %c5_71 = arith.constant 5 : index
        %c0_72 = arith.constant 0 : index
        %123 = vector.load %arg8[%122, %c5_71, %c0_72] : memref<28x28x128xf32, #tpu.memory_space<vmem>>, vector<4x16x128xf32>
        %124 = vector.extract_strided_slice %35 {offsets = [5, 0], sizes = [1, 128], strides = [1, 1]} : vector<13x128xf32> to vector<1x128xf32>
        %125 = vector.shape_cast %124 : vector<1x128xf32> to vector<128xf32>
        %126 = vector.shape_cast %125 : vector<128xf32> to vector<1x1x128xf32>
        %127 = vector.broadcast %126 : vector<1x1x128xf32> to vector<4x16x128xf32>
        %128 = arith.mulf %121, %127 : vector<4x16x128xf32>
        %129 = arith.addf %113, %128 : vector<4x16x128xf32>
        %130 = vector.extract_strided_slice %38 {offsets = [5, 0], sizes = [1, 128], strides = [1, 1]} : vector<13x128xf32> to vector<1x128xf32>
        %131 = vector.shape_cast %130 : vector<1x128xf32> to vector<128xf32>
        %132 = vector.shape_cast %131 : vector<128xf32> to vector<1x1x128xf32>
        %133 = vector.broadcast %132 : vector<1x1x128xf32> to vector<4x16x128xf32>
        %134 = arith.mulf %123, %133 : vector<4x16x128xf32>
        %135 = arith.addf %119, %134 : vector<4x16x128xf32>
        %136 = arith.index_cast %39 : i32 to index
        %c6_73 = arith.constant 6 : index
        %c0_74 = arith.constant 0 : index
        %137 = vector.load %arg7[%136, %c6_73, %c0_74] : memref<28x28x128xf32, #tpu.memory_space<vmem>>, vector<4x16x128xf32>
        %138 = arith.index_cast %39 : i32 to index
        %c6_75 = arith.constant 6 : index
        %c0_76 = arith.constant 0 : index
        %139 = vector.load %arg8[%138, %c6_75, %c0_76] : memref<28x28x128xf32, #tpu.memory_space<vmem>>, vector<4x16x128xf32>
        %140 = vector.extract_strided_slice %35 {offsets = [6, 0], sizes = [1, 128], strides = [1, 1]} : vector<13x128xf32> to vector<1x128xf32>
        %141 = vector.shape_cast %140 : vector<1x128xf32> to vector<128xf32>
        %142 = vector.shape_cast %141 : vector<128xf32> to vector<1x1x128xf32>
        %143 = vector.broadcast %142 : vector<1x1x128xf32> to vector<4x16x128xf32>
        %144 = arith.mulf %137, %143 : vector<4x16x128xf32>
        %145 = arith.addf %129, %144 : vector<4x16x128xf32>
        %146 = vector.extract_strided_slice %38 {offsets = [6, 0], sizes = [1, 128], strides = [1, 1]} : vector<13x128xf32> to vector<1x128xf32>
        %147 = vector.shape_cast %146 : vector<1x128xf32> to vector<128xf32>
        %148 = vector.shape_cast %147 : vector<128xf32> to vector<1x1x128xf32>
        %149 = vector.broadcast %148 : vector<1x1x128xf32> to vector<4x16x128xf32>
        %150 = arith.mulf %139, %149 : vector<4x16x128xf32>
        %151 = arith.addf %135, %150 : vector<4x16x128xf32>
        %152 = arith.index_cast %39 : i32 to index
        %c7 = arith.constant 7 : index
        %c0_77 = arith.constant 0 : index
        %153 = vector.load %arg7[%152, %c7, %c0_77] : memref<28x28x128xf32, #tpu.memory_space<vmem>>, vector<4x16x128xf32>
        %154 = arith.index_cast %39 : i32 to index
        %c7_78 = arith.constant 7 : index
        %c0_79 = arith.constant 0 : index
        %155 = vector.load %arg8[%154, %c7_78, %c0_79] : memref<28x28x128xf32, #tpu.memory_space<vmem>>, vector<4x16x128xf32>
        %156 = vector.extract_strided_slice %35 {offsets = [7, 0], sizes = [1, 128], strides = [1, 1]} : vector<13x128xf32> to vector<1x128xf32>
        %157 = vector.shape_cast %156 : vector<1x128xf32> to vector<128xf32>
        %158 = vector.shape_cast %157 : vector<128xf32> to vector<1x1x128xf32>
        %159 = vector.broadcast %158 : vector<1x1x128xf32> to vector<4x16x128xf32>
        %160 = arith.mulf %153, %159 : vector<4x16x128xf32>
        %161 = arith.addf %145, %160 : vector<4x16x128xf32>
        %162 = vector.extract_strided_slice %38 {offsets = [7, 0], sizes = [1, 128], strides = [1, 1]} : vector<13x128xf32> to vector<1x128xf32>
        %163 = vector.shape_cast %162 : vector<1x128xf32> to vector<128xf32>
        %164 = vector.shape_cast %163 : vector<128xf32> to vector<1x1x128xf32>
        %165 = vector.broadcast %164 : vector<1x1x128xf32> to vector<4x16x128xf32>
        %166 = arith.mulf %155, %165 : vector<4x16x128xf32>
        %167 = arith.addf %151, %166 : vector<4x16x128xf32>
        %168 = arith.index_cast %39 : i32 to index
        %c8 = arith.constant 8 : index
        %c0_80 = arith.constant 0 : index
        %169 = vector.load %arg7[%168, %c8, %c0_80] : memref<28x28x128xf32, #tpu.memory_space<vmem>>, vector<4x16x128xf32>
        %170 = arith.index_cast %39 : i32 to index
        %c8_81 = arith.constant 8 : index
        %c0_82 = arith.constant 0 : index
        %171 = vector.load %arg8[%170, %c8_81, %c0_82] : memref<28x28x128xf32, #tpu.memory_space<vmem>>, vector<4x16x128xf32>
        %172 = vector.extract_strided_slice %35 {offsets = [8, 0], sizes = [1, 128], strides = [1, 1]} : vector<13x128xf32> to vector<1x128xf32>
        %173 = vector.shape_cast %172 : vector<1x128xf32> to vector<128xf32>
        %174 = vector.shape_cast %173 : vector<128xf32> to vector<1x1x128xf32>
        %175 = vector.broadcast %174 : vector<1x1x128xf32> to vector<4x16x128xf32>
        %176 = arith.mulf %169, %175 : vector<4x16x128xf32>
        %177 = arith.addf %161, %176 : vector<4x16x128xf32>
        %178 = vector.extract_strided_slice %38 {offsets = [8, 0], sizes = [1, 128], strides = [1, 1]} : vector<13x128xf32> to vector<1x128xf32>
        %179 = vector.shape_cast %178 : vector<1x128xf32> to vector<128xf32>
        %180 = vector.shape_cast %179 : vector<128xf32> to vector<1x1x128xf32>
        %181 = vector.broadcast %180 : vector<1x1x128xf32> to vector<4x16x128xf32>
        %182 = arith.mulf %171, %181 : vector<4x16x128xf32>
        %183 = arith.addf %167, %182 : vector<4x16x128xf32>
        %184 = arith.index_cast %39 : i32 to index
        %c9 = arith.constant 9 : index
        %c0_83 = arith.constant 0 : index
        %185 = vector.load %arg7[%184, %c9, %c0_83] : memref<28x28x128xf32, #tpu.memory_space<vmem>>, vector<4x16x128xf32>
        %186 = arith.index_cast %39 : i32 to index
        %c9_84 = arith.constant 9 : index
        %c0_85 = arith.constant 0 : index
        %187 = vector.load %arg8[%186, %c9_84, %c0_85] : memref<28x28x128xf32, #tpu.memory_space<vmem>>, vector<4x16x128xf32>
        %188 = vector.extract_strided_slice %35 {offsets = [9, 0], sizes = [1, 128], strides = [1, 1]} : vector<13x128xf32> to vector<1x128xf32>
        %189 = vector.shape_cast %188 : vector<1x128xf32> to vector<128xf32>
        %190 = vector.shape_cast %189 : vector<128xf32> to vector<1x1x128xf32>
        %191 = vector.broadcast %190 : vector<1x1x128xf32> to vector<4x16x128xf32>
        %192 = arith.mulf %185, %191 : vector<4x16x128xf32>
        %193 = arith.addf %177, %192 : vector<4x16x128xf32>
        %194 = vector.extract_strided_slice %38 {offsets = [9, 0], sizes = [1, 128], strides = [1, 1]} : vector<13x128xf32> to vector<1x128xf32>
        %195 = vector.shape_cast %194 : vector<1x128xf32> to vector<128xf32>
        %196 = vector.shape_cast %195 : vector<128xf32> to vector<1x1x128xf32>
        %197 = vector.broadcast %196 : vector<1x1x128xf32> to vector<4x16x128xf32>
        %198 = arith.mulf %187, %197 : vector<4x16x128xf32>
        %199 = arith.addf %183, %198 : vector<4x16x128xf32>
        %200 = arith.index_cast %39 : i32 to index
        %c10 = arith.constant 10 : index
        %c0_86 = arith.constant 0 : index
        %201 = vector.load %arg7[%200, %c10, %c0_86] : memref<28x28x128xf32, #tpu.memory_space<vmem>>, vector<4x16x128xf32>
        %202 = arith.index_cast %39 : i32 to index
        %c10_87 = arith.constant 10 : index
        %c0_88 = arith.constant 0 : index
        %203 = vector.load %arg8[%202, %c10_87, %c0_88] : memref<28x28x128xf32, #tpu.memory_space<vmem>>, vector<4x16x128xf32>
        %204 = vector.extract_strided_slice %35 {offsets = [10, 0], sizes = [1, 128], strides = [1, 1]} : vector<13x128xf32> to vector<1x128xf32>
        %205 = vector.shape_cast %204 : vector<1x128xf32> to vector<128xf32>
        %206 = vector.shape_cast %205 : vector<128xf32> to vector<1x1x128xf32>
        %207 = vector.broadcast %206 : vector<1x1x128xf32> to vector<4x16x128xf32>
        %208 = arith.mulf %201, %207 : vector<4x16x128xf32>
        %209 = arith.addf %193, %208 : vector<4x16x128xf32>
        %210 = vector.extract_strided_slice %38 {offsets = [10, 0], sizes = [1, 128], strides = [1, 1]} : vector<13x128xf32> to vector<1x128xf32>
        %211 = vector.shape_cast %210 : vector<1x128xf32> to vector<128xf32>
        %212 = vector.shape_cast %211 : vector<128xf32> to vector<1x1x128xf32>
        %213 = vector.broadcast %212 : vector<1x1x128xf32> to vector<4x16x128xf32>
        %214 = arith.mulf %203, %213 : vector<4x16x128xf32>
        %215 = arith.addf %199, %214 : vector<4x16x128xf32>
        %216 = arith.index_cast %39 : i32 to index
        %c11 = arith.constant 11 : index
        %c0_89 = arith.constant 0 : index
        %217 = vector.load %arg7[%216, %c11, %c0_89] : memref<28x28x128xf32, #tpu.memory_space<vmem>>, vector<4x16x128xf32>
        %218 = arith.index_cast %39 : i32 to index
        %c11_90 = arith.constant 11 : index
        %c0_91 = arith.constant 0 : index
        %219 = vector.load %arg8[%218, %c11_90, %c0_91] : memref<28x28x128xf32, #tpu.memory_space<vmem>>, vector<4x16x128xf32>
        %220 = vector.extract_strided_slice %35 {offsets = [11, 0], sizes = [1, 128], strides = [1, 1]} : vector<13x128xf32> to vector<1x128xf32>
        %221 = vector.shape_cast %220 : vector<1x128xf32> to vector<128xf32>
        %222 = vector.shape_cast %221 : vector<128xf32> to vector<1x1x128xf32>
        %223 = vector.broadcast %222 : vector<1x1x128xf32> to vector<4x16x128xf32>
        %224 = arith.mulf %217, %223 : vector<4x16x128xf32>
        %225 = arith.addf %209, %224 : vector<4x16x128xf32>
        %226 = vector.extract_strided_slice %38 {offsets = [11, 0], sizes = [1, 128], strides = [1, 1]} : vector<13x128xf32> to vector<1x128xf32>
        %227 = vector.shape_cast %226 : vector<1x128xf32> to vector<128xf32>
        %228 = vector.shape_cast %227 : vector<128xf32> to vector<1x1x128xf32>
        %229 = vector.broadcast %228 : vector<1x1x128xf32> to vector<4x16x128xf32>
        %230 = arith.mulf %219, %229 : vector<4x16x128xf32>
        %231 = arith.addf %215, %230 : vector<4x16x128xf32>
        %232 = arith.index_cast %39 : i32 to index
        %c12 = arith.constant 12 : index
        %c0_92 = arith.constant 0 : index
        %233 = vector.load %arg7[%232, %c12, %c0_92] : memref<28x28x128xf32, #tpu.memory_space<vmem>>, vector<4x16x128xf32>
        %234 = arith.index_cast %39 : i32 to index
        %c12_93 = arith.constant 12 : index
        %c0_94 = arith.constant 0 : index
        %235 = vector.load %arg8[%234, %c12_93, %c0_94] : memref<28x28x128xf32, #tpu.memory_space<vmem>>, vector<4x16x128xf32>
        %236 = vector.extract_strided_slice %35 {offsets = [12, 0], sizes = [1, 128], strides = [1, 1]} : vector<13x128xf32> to vector<1x128xf32>
        %237 = vector.shape_cast %236 : vector<1x128xf32> to vector<128xf32>
        %238 = vector.shape_cast %237 : vector<128xf32> to vector<1x1x128xf32>
        %239 = vector.broadcast %238 : vector<1x1x128xf32> to vector<4x16x128xf32>
        %240 = arith.mulf %233, %239 : vector<4x16x128xf32>
        %241 = arith.addf %225, %240 : vector<4x16x128xf32>
        %242 = vector.extract_strided_slice %38 {offsets = [12, 0], sizes = [1, 128], strides = [1, 1]} : vector<13x128xf32> to vector<1x128xf32>
        %243 = vector.shape_cast %242 : vector<1x128xf32> to vector<128xf32>
        %244 = vector.shape_cast %243 : vector<128xf32> to vector<1x1x128xf32>
        %245 = vector.broadcast %244 : vector<1x1x128xf32> to vector<4x16x128xf32>
        %246 = arith.mulf %235, %245 : vector<4x16x128xf32>
        %247 = arith.addf %231, %246 : vector<4x16x128xf32>
        scf.yield %241, %247 : vector<4x16x128xf32>, vector<4x16x128xf32>
      }
      %c13_i32_45 = arith.constant 13 : i32
      %cst_46 = arith.constant 11.3137083 : f32
      %26 = vector.broadcast %cst_46 : f32 to vector<4x16x128xf32>
      %27 = arith.mulf %25#1, %26 : vector<4x16x128xf32>
      %28 = arith.mulf %25#0, %27 : vector<4x16x128xf32>
      %c0_47 = arith.constant 0 : index
      %29 = arith.index_cast %22 : i32 to index
      %c0_48 = arith.constant 0 : index
      %c0_49 = arith.constant 0 : index
      %30 = vector.load %arg6[%c0_47, %29, %c0_48, %c0_49] : memref<1x16x16x128xf32, #tpu.memory_space<vmem>>, vector<1x4x16x128xf32>
      %31 = vector.shape_cast %30 : vector<1x4x16x128xf32> to vector<4x16x128xf32>
      %32 = vector.shape_cast %28 : vector<4x16x128xf32> to vector<1x4x16x128xf32>
      tpu.vector_store %arg6[%c0_47, %29, %c0_48, %c0_49], %32 {strides = array<i32>} : memref<1x16x16x128xf32, #tpu.memory_space<vmem>>, vector<1x4x16x128xf32>,
    }
    %c4_i32_38 = arith.constant 4 : i32
    return
  }
  func.func @transform_0(%arg0: i32, %arg1: i32) -> (i32, i32, i32, i32) {
    %c0_i32 = arith.constant 0 : i32
    %c0_i32_0 = arith.constant 0 : i32
    %c0_i32_1 = arith.constant 0 : i32
    return %arg0, %c0_i32, %c0_i32_0, %arg1 : i32, i32, i32, i32
  }
  func.func @transform_1(%arg0: i32, %arg1: i32) -> (i32, i32, i32, i32) {
    %c0_i32 = arith.constant 0 : i32
    %c0_i32_0 = arith.constant 0 : i32
    %c0_i32_1 = arith.constant 0 : i32
    return %arg0, %c0_i32, %c0_i32_0, %arg1 : i32, i32, i32, i32
  }
  func.func @transform_2(%arg0: i32, %arg1: i32) -> (i32, i32, i32) {
    %c0_i32 = arith.constant 0 : i32
    %c0_i32_0 = arith.constant 0 : i32
    %c0_i32_1 = arith.constant 0 : i32
    return %c0_i32, %c0_i32_0, %arg1 : i32, i32, i32
  }
  func.func @transform_3(%arg0: i32, %arg1: i32) -> (i32, i32, i32) {
    %c0_i32 = arith.constant 0 : i32
    %c0_i32_0 = arith.constant 0 : i32
    %c0_i32_1 = arith.constant 0 : i32
    return %c0_i32, %c0_i32_0, %arg1 : i32, i32, i32
  }
  func.func @transform_4(%arg0: i32, %arg1: i32) -> (i32, i32, i32, i32) {
    %c0_i32 = arith.constant 0 : i32
    %c0_i32_0 = arith.constant 0 : i32
    %c0_i32_1 = arith.constant 0 : i32
    return %arg0, %c0_i32, %c0_i32_0, %arg1 : i32, i32, i32, i32
  }
}

</mosaic_0001>

<bundles_post_ra>
// kernel: tpu_custom_call.1
= control target key start
LH: loop header
LB: loop body
LE: loop exit
PB: predicated region body
PF: predicated region fallthrough
CT: control target
= control target key end

     0   :  { %s3540_s0 = inlined_call_operand.hbm [shape: f32[2,16,16,128], index: 0, kind: input, shape index: {}]   ;;  %s3541_s1 = inlined_call_operand.hbm [shape: f32[2,16,16,128], index: 1, kind: input, shape index: {}]   ;;  %s3542_s2 = inlined_call_operand.hbm [shape: f32[13,13,128], index: 2, kind: input, shape index: {}]   ;;  %s3543_s3 = inlined_call_operand.hbm [shape: f32[13,13,128], index: 3, kind: input, shape index: {}]   ;;  %s3544_s4 = inlined_call_operand.hbm [shape: f32[2,16,16,128], index: 4, kind: output, shape index: {}]  }
   0x1   :  { %3592 = sst [smem:[#allocation55_spill]] %s3540_s0 }
   0x2   :  { %3593 = sst [smem:[#allocation56_spill]] %s3542_s2 }
   0x3   :  { %3594 = sst [smem:[#allocation57_spill]] %s3543_s3 }
   0x4   :  { %9 = vsyncpa [#allocation5], 0 }
   0x5   :  { %11 = vsyncpa [#allocation5 + $0x1], 0 }
   0x6   :  { %12 = vsyncpa [#allocation8], 0 }
   0x7   :  { %14 = vsyncpa [#allocation8 + $0x1], 0 }
   0x8   :  { %15 = vsyncpa [#allocation11], 0 }
   0x9   :  { %16 = vsyncpa [#allocation6], 0 }
   0xa   :  { %18 = vsyncpa [#allocation6 + $0x1], 0  ;;  %s2244_s15 = smov 0   ;;  %s2246_s16 = smov 0  }
   0xb   :  { %s2248_s17 = smov 0   ;;  %s2250_s18 = smov 0  }
   0xc   :  { %s2252_s19 = smov 0   ;;  %s2254_s20 = smov 0  }
   0xd LB: > { %3595 = sst [smem:[#allocation18_spill]] %s2131_s19  ;;  %s2275_s21 = sadd.s32 4294967295, %s2135_s20   ;;  %s2135_s20 = sphi %s2254_s20, %s24_s20   ;;  %s2131_s19 = sphi %s2252_s19, %s3711_s19   ;;  %s2127_s18 = sphi %s2250_s18, %s3710_s18   ;;  %s2123_s17 = sphi %s2248_s17, %s3714_s17   ;;  %s2119_s16 = sphi %s2246_s16, %s3713_s16   ;;  %s2115_s15 = sphi %s2244_s15, %s3712_s15  }
   0xe   : > { %s1586_s22 = sadd.s32 4294967294, %s2135_s20   ;;  %p58_p0 = scmp.ne.s32.totalorder %s2119_s16, %s2115_s15 }
   0xf   : > { %p3545_p1 = scmp.eq.s32.totalorder %s2275_s21, 0  ;;  %p170_p3 = scmp.eq.s32.totalorder %s1586_s22, 1 }
  0x10   : > { %p1587_p5 = scmp.ge.s32.totalorder %s2135_s20, 1  ;;  %p177_p7 = scmp.lt.s32.totalorder %s2135_s20, 3 }
  0x11   : > { %p2284_p4 = por %p3545_p1, %p58_p0  ;;  %p2289_p6 = por %p170_p3, %p58_p0 }
  0x12   : > { %p2294_p8 = pnand %p1587_p5, %p177_p7  ;;  %s2209_s26 = smov [#allocation9]  }
  0x13   : > { %s3596_s23 = scalar_select %p2284_p4, 1, 0 }
  0x14   : > { %s3597_s24 = scalar_select %p2289_p6, 1, 0 }
  0x15   : > { %s191_s27 = sshll.u32 %s2209_s26, 4  ;;  %p1630_p9 = pneg %p2294_p8  ;;  %s2298_s27 = int_to_ptr.vmem [resolvable:$true] %s191_s27 }
  0x16   : > { %s2210_s29 = smov [#allocation10]   ;;  %s3600_s2 = sld [smem:[#allocation56_spill]] }
  0x17   : > { %p2305_p11 = pnand %p1630_p9, %p3545_p1  ;;  %s206_s30 = sshll.u32 %s2210_s29, 4  ;;  %s2309_s30 = int_to_ptr.vmem [resolvable:$true] %s206_s30 }
  0x19   : > { %p1855_p13 = pneg %p2305_p11 }
  0x1c   : > { %s1853_s7 = scalar_lea.hbm %s3600_s2, 3328 }
  0x1d   : > { %p1854_p12 = scmp.ne.s32.totalorder %s3600_s2, %s1853_s7  ;;  %p1860_p5 = scmp.lt.u32.totalorder %s1853_s7, %s3600_s2 }
  0x1f   : > { %p1856_p0 = pnand %p1855_p13, %p1854_p12 }
  0x21   : > { %p1857_p3 = pneg %p1856_p0 }
  0x23   : > { %p1862_p7 = pnand %p1860_p5, %p1857_p3 }
  0x25   : > { %1865 = shalt.err (!%p1862_p7)
}
  0x26   : > { %s1866_s12 = scalar_lea.vmem %s2298_s27, 3328  ;;  %p1874_p2 = scmp.lt.s32.totalorder %s2298_s27, %s2298_s27 }
  0x27   : > { %p1867_p9 = scmp.ne.s32.totalorder %s2298_s27, %s1866_s12  ;;  %p1875_p12 = scmp.lt.s32.totalorder %s1866_s12, %s1866_s12 }
  0x29   : > { %p1869_p10 = pnand %p1867_p9, %p1855_p13  ;;  %p1876_p0 = por %p1875_p12, %p1874_p2 }
  0x2b   : > { %p1870_p1 = pneg %p1869_p10 }
  0x2d   : > { %p1877_p6 = pnand %p1876_p0, %p1870_p1 }
  0x2f   : > { %1880 = shalt.err (!%p1877_p6)
}
  0x30   : > { %s3546_s13 = smov 128   ;;  %s3548_s14 = smov 8  }
  0x31   : > { %1633 = dma.hbm_to_vmem [thread:$0]  (!%p2305_p11), %s3600_s2, 3328, %s2298_s27, [#allocation8], %s3546_s13, %s3546_s13, %s3548_s14  }
  0x32   : > { %s3601_s3 = sld [smem:[#allocation57_spill]] }
  0x38   : > { %s1881_s6 = scalar_lea.hbm %s3601_s3, 3328 }
  0x39   : > { %p1882_p1 = scmp.ne.s32.totalorder %s3601_s3, %s1881_s6  ;;  %p1888_p10 = scmp.lt.u32.totalorder %s1881_s6, %s3601_s3 }
  0x3b   : > { %p1884_p2 = pnand %p1882_p1, %p1855_p13 }
  0x3d   : > { %p1885_p6 = pneg %p1884_p2 }
  0x3f   : > { %p1890_p3 = pnand %p1888_p10, %p1885_p6 }
  0x41   : > { %1893 = shalt.err (!%p1890_p3)
}
  0x42   : > { %s1894_s27 = scalar_lea.vmem %s2309_s30, 3328  ;;  %p1902_p12 = scmp.lt.s32.totalorder %s2309_s30, %s2309_s30 }
  0x43   : > { %p1895_p5 = scmp.ne.s32.totalorder %s2309_s30, %s1894_s27  ;;  %p1903_p0 = scmp.lt.s32.totalorder %s1894_s27, %s1894_s27 }
  0x45   : > { %p1897_p7 = pnand %p1895_p5, %p1855_p13  ;;  %p1904_p1 = por %p1903_p0, %p1902_p12 }
  0x47   : > { %p1898_p9 = pneg %p1897_p7 }
  0x49   : > { %p1905_p2 = pnand %p1904_p1, %p1898_p9 }
  0x4b   : > { %1908 = shalt.err (!%p1905_p2)
}
  0x4c   : > { %1636 = dma.hbm_to_vmem [thread:$0]  (!%p2305_p11), %s3601_s3, 3328, %s2309_s30, [#allocation11], %s3546_s13, %s3546_s13, %s3548_s14  }
  0x4d   : > { %s36_s28 = sadd.s32 1, %s2131_s19  ;;  %s45_s22 = sadd.s32 1, %s2123_s17 }
  0x4e   : > { %p38_p13 = scmp.ge.s32.totalorder %s36_s28, 2  ;;  %p52_p6 = scmp.ne.s32.totalorder %s2123_s17, %s2119_s16 }
  0x4f   : > { %p53_p10 = scmp.eq.s32.totalorder %s2135_s20, 0  ;;  %p1650_p3 = scmp.lt.s32.totalorder %s2135_s20, 2 }
  0x50   : > { %s3716_s28 = smov (%p38_p13, %s36_s28), 0  ;;  %p3603_p7 = scmp.eq.s32.totalorder %s2275_s21, 1 }
  0x51   : > { %3602 = sst [smem:[#allocation19_spill]] %s3716_s28  ;;  %p54_p5 = por %p53_p10, %p52_p6 }
  0x52   : > { %p2379_p9 = por %p3603_p7, %p52_p6  ;;  %s40_s29 = ssub.s32 %s2131_s19, %s3716_s28 }
  0x53   : > { %s220_s5 = sand.u32 1, %s2123_s17   ;;  %p43_p12 = scmp.eq.s32.totalorder %s40_s29, 0 }
  0x54   : > { %s3604_s26 = scalar_select %p2379_p9, 1, 0 }
  0x55   : > { %s2386_s30 = sshll.u32 %s220_s5, 8  ;;  %s1612_s6 = sshll.u32 %s2131_s19, 12 }
  0x56   : > { %s2390_s7 = scalar_select %p43_p12, %s2123_s17, %s45_s22  }
  0x57   : > { %s3605_s0 = sld [smem:[#allocation55_spill]]  ;;  %s224_s27 = scalar_lea.vmem [#allocation4], %s2386_s30 }
  0x58   : > { %s232_s11 = sshll.u32 %s224_s27, 4  ;;  %p2400_p11 = pnand %p1650_p3, %p54_p5  ;;  %s2404_s11 = int_to_ptr.vmem [resolvable:$true] %s232_s11 }
  0x59   : > { %s2409_s8 = scalar_lea.hbm %s3541_s1, %s1612_s6  ;;  %s2411_s9 = scalar_lea.sflag [#allocation5], %s220_s5 }
  0x5a   : > { %p1911_p1 = pneg %p2400_p11 }
  0x5d   : > { %s2395_s10 = scalar_lea.hbm %s3605_s0, %s1612_s6  ;;  %s1914_s2 = scalar_lea.hbm %s3605_s0, 8192 }
  0x5e   : > { %s1909_s13 = scalar_lea.hbm %s2395_s10, 4096  ;;  %p1915_p6 = scmp.lt.u32.totalorder %s2395_s10, %s3605_s0 }
  0x5f   : > { %p1910_p0 = scmp.ne.s32.totalorder %s2395_s10, %s1909_s13  ;;  %p1916_p10 = scmp.lt.u32.totalorder %s1914_s2, %s1909_s13 }
  0x60   : > { %p1918_p5 = scmp.lt.u32.totalorder %s1909_s13, %s2395_s10 }
  0x61   : > { %p1912_p2 = pnand %p1911_p1, %p1910_p0  ;;  %p1917_p3 = por %p1916_p10, %p1915_p6 }
  0x63   : > { %p1913_p13 = pneg %p1912_p2  ;;  %p1919_p7 = por %p1918_p5, %p1917_p3 }
  0x65   : > { %p1920_p12 = pnand %p1919_p7, %p1913_p13 }
  0x67   : > { %1923 = shalt.err (!%p1920_p12)
}
  0x68   : > { %s1924_s5 = scalar_lea.vmem %s2404_s11, 4096  ;;  %s2213_s14 = smov [#allocation4]  }
  0x69   : > { %p1925_p0 = scmp.ne.s32.totalorder %s2404_s11, %s1924_s5  ;;  %s1929_s6 = sshll.u32 %s2213_s14, 4  ;;  %s1930_s6 = int_to_ptr.vmem [resolvable:$false] %s1929_s6 }
  0x6a   : > { %s1931_s3 = scalar_lea.vmem %s1930_s6, 8192  ;;  %p1932_p4 = scmp.lt.s32.totalorder %s2404_s11, %s1930_s6 }
  0x6b   : > { %p1927_p2 = pnand %p1925_p0, %p1911_p1  ;;  %p1933_p6 = scmp.lt.s32.totalorder %s1931_s3, %s1924_s5 }
  0x6d   : > { %p1928_p9 = pneg %p1927_p2  ;;  %p1934_p10 = por %p1933_p6, %p1932_p4 }
  0x6f   : > { %p1935_p3 = pnand %p1934_p10, %p1928_p9 }
  0x71   : > { %1938 = shalt.err (!%p1935_p3)
}
  0x72   : > { %s3607_s2 = smov 8   ;;  %s3608_s13 = smov 128  }
  0x73   : > { %1640 = dma.hbm_to_vmem [thread:$0]  (!%p2400_p11), %s2395_s10, 4096, %s2404_s11, %s2411_s9, %s3608_s13, %s3608_s13, %s3607_s2  }
  0x74   : > { %s246_s28 = scalar_lea.vmem [#allocation7], %s2386_s30  ;;  %s242_s29 = sand.u32 1, %s2135_s20  }
  0x75   : > { %s254_s22 = sshll.u32 %s246_s28, 4  ;;  %s2446_s27 = scalar_lea.sflag [#allocation8], %s242_s29  ;;  %s2444_s22 = int_to_ptr.vmem [resolvable:$true] %s254_s22 }
  0x76   : > { %s1939_s5 = scalar_lea.hbm %s2409_s8, 4096  ;;  %s1944_s3 = scalar_lea.hbm %s3541_s1, 8192 }
  0x77   : > { %p1940_p4 = scmp.ne.s32.totalorder %s2409_s8, %s1939_s5  ;;  %p1945_p5 = scmp.lt.u32.totalorder %s2409_s8, %s3541_s1 }
  0x78   : > { %p1946_p7 = scmp.lt.u32.totalorder %s1944_s3, %s1939_s5  ;;  %p1948_p0 = scmp.lt.u32.totalorder %s1939_s5, %s2409_s8 }
  0x79   : > { %p1942_p9 = pnand %p1940_p4, %p1911_p1 }
  0x7a   : > { %p1947_p12 = por %p1946_p7, %p1945_p5 }
  0x7b   : > { %p1943_p13 = pneg %p1942_p9 }
  0x7c   : > { %p1949_p2 = por %p1948_p0, %p1947_p12 }
  0x7e   : > { %p1950_p6 = pnand %p1949_p2, %p1943_p13 }
  0x80   : > { %1953 = shalt.err (!%p1950_p6)
}
  0x81   : > { %s1954_s30 = scalar_lea.vmem %s2444_s22, 4096  ;;  %s2214_s10 = smov [#allocation7]  }
  0x82   : > { %p1955_p10 = scmp.ne.s32.totalorder %s2444_s22, %s1954_s30  ;;  %s1959_s11 = sshll.u32 %s2214_s10, 4  ;;  %s1960_s11 = int_to_ptr.vmem [resolvable:$false] %s1959_s11 }
  0x83   : > { %s1961_s0 = scalar_lea.vmem %s1960_s11, 8192  ;;  %p1962_p9 = scmp.lt.s32.totalorder %s2444_s22, %s1960_s11 }
  0x84   : > { %p1957_p3 = pnand %p1955_p10, %p1911_p1  ;;  %p1963_p5 = scmp.lt.s32.totalorder %s1961_s0, %s1954_s30 }
  0x86   : > { %p1958_p4 = pneg %p1957_p3  ;;  %p1964_p7 = por %p1963_p5, %p1962_p9 }
  0x88   : > { %p1965_p12 = pnand %p1964_p7, %p1958_p4 }
  0x8a   : > { %1968 = shalt.err (!%p1965_p12)
}
  0x8b   : > { %1643 = dma.hbm_to_vmem [thread:$0]  (!%p2400_p11), %s2409_s8, 4096, %s2444_s22, %s2446_s27, %s3608_s13, %s3608_s13, %s3607_s2  }
  0x8c   : > { %266 = sbr.rel (%p2294_p8) target bundleno = 427 (0x1ab), region = 36  ;;  %s2478_s19 = sand.u32 (!%p2294_p8), 1, %s2119_s16  }
  0x8d   : > { %s2481_s9 = sshll.u32 (!%p2294_p8), %s2478_s19, 8  ;;  %s269_s12 = scalar_lea.sflag (!%p2294_p8), [#allocation5], %s2478_s19 }
  0x8e   : > { %s2485_s28 = scalar_lea.vmem (!%p2294_p8), [#allocation4], %s2481_s9  ;;  %p3609_p1 = scmp.ne.s32.totalorder (!%p2294_p8), %s3596_s23, 0 }
  0x93   : > { %2094 = dma.done.wait (%p3609_p1), %s269_s12, 4096  }
  0x94   : > { %2096 = vsyncadd (%p3609_p1), %s269_s12, 4294963200  ;;  %s277_s25 = sand.u32 1, %s2275_s21   ;;  %s2493_s2 = scalar_lea.vmem [#allocation7], %s2481_s9 }
  0x95   : > { %s278_s8 = scalar_lea.sflag [#allocation8], %s277_s25 }
  0x96   : > { %2098 = dma.done.wait (%p3609_p1), %s278_s8, 4096  }
  0x97   : > { %2100 = vsyncadd (%p3609_p1), %s278_s8, 4294963200  ;;  %p3610_p8 = scmp.eq.s32.totalorder %s2275_s21, 0 }
  0x99   : > { %2102 = dma.done.wait (%p3610_p8), [#allocation8], 3328   ;;  %p3611_p11 = pmov %p3610_p8 }
  0x9a   : > { %p3612_p13 = pmov %p3610_p8 }
  0x9b   : > { %2104 = vsyncadd (%p3611_p11), [#allocation8], 4294963968 }
  0x9c   : > { %2106 = dma.done.wait (%p3612_p13), [#allocation11], 3328   ;;  %p3613_p0 = pmov %p3610_p8 }
  0x9d   : > { %v2215_v0 = vmov 0.0   ;;  %v401_v1 = vld [vmem:[%s2485_s28] sm:$0xff]  ;;  %v402_v2 = vld [vmem:[%s2485_s28 + $0x8] sm:$0xff]  ;;  %v403_v3 = vld [vmem:[%s2485_s28 + $0x10] sm:$0xff]  ;;  %s318_s21 = scalar_lea.vmem [#allocation12], %s2481_s9  ;;  %s2732_s23 = smov 0  }
  0x9e   : > { %2108 = vsyncadd (%p3613_p0), [#allocation11], 4294963968  ;;  %319 = vst [vmem:[#allocation2] sm:$0xff] %v2215_v0  ;;  %v404_v4 = vld [vmem:[%s2485_s28 + $0x18] sm:$0xff]  ;;  %v405_v5 = vld [vmem:[%s2485_s28 + $0x20] sm:$0xff] }
  0x9f   : > { %320 = vst [vmem:[#allocation2 + $0x8] sm:$0xff] %v2215_v0  ;;  %321 = vst [vmem:[#allocation2 + $0x10] sm:$0xff] %v2215_v0  ;;  %v406_v6 = vld [vmem:[%s2485_s28 + $0x28] sm:$0xff]  ;;  %v407_v7 = vld [vmem:[%s2485_s28 + $0x30] sm:$0xff] }
  0xa0   : > { %322 = vst [vmem:[#allocation2 + $0x18] sm:$0xf] %v2215_v0  ;;  %323 = vst [vmem:[#allocation2 + $0x20] sm:$0xff] %v2215_v0  ;;  %v408_v8 = vld [vmem:[%s2485_s28 + $0x38] sm:$0xff]  ;;  %v409_v9 = vld [vmem:[%s2485_s28 + $0x40] sm:$0xff] }
  0xa1   : > { %324 = vst [vmem:[#allocation2 + $0x28] sm:$0xff] %v2215_v0  ;;  %325 = vst [vmem:[#allocation2 + $0x30] sm:$0xff] %v2215_v0  ;;  %v410_v10 = vld [vmem:[%s2485_s28 + $0x48] sm:$0xff]  ;;  %v411_v11 = vld [vmem:[%s2485_s28 + $0x50] sm:$0xff] }
  0xa2   : > { %326 = vst [vmem:[#allocation2 + $0x38] sm:$0xf] %v2215_v0  ;;  %327 = vst [vmem:[#allocation2 + $0x40] sm:$0xff] %v2215_v0  ;;  %v412_v12 = vld [vmem:[%s2485_s28 + $0x58] sm:$0xff]  ;;  %v413_v13 = vld [vmem:[%s2485_s28 + $0x60] sm:$0xff] }
  0xa3   : > { %328 = vst [vmem:[#allocation2 + $0x48] sm:$0xff] %v2215_v0  ;;  %329 = vst [vmem:[#allocation2 + $0x50] sm:$0xff] %v2215_v0  ;;  %v414_v14 = vld [vmem:[%s2485_s28 + $0x68] sm:$0xff]  ;;  %v415_v15 = vld [vmem:[%s2485_s28 + $0x70] sm:$0xff] }
  0xa4   : > { %330 = vst [vmem:[#allocation2 + $0x58] sm:$0xf] %v2215_v0  ;;  %331 = vst [vmem:[#allocation2 + $0x60] sm:$0xff] %v2215_v0  ;;  %v416_v16 = vld [vmem:[%s2485_s28 + $0x78] sm:$0xff]  ;;  %v417_v17 = vld [vmem:[%s2485_s28 + $0x80] sm:$0xff] }
  0xa5   : > { %332 = vst [vmem:[#allocation2 + $0x68] sm:$0xff] %v2215_v0  ;;  %333 = vst [vmem:[#allocation2 + $0x70] sm:$0xff] %v2215_v0  ;;  %v418_v18 = vld [vmem:[%s2485_s28 + $0x88] sm:$0xff]  ;;  %v419_v19 = vld [vmem:[%s2485_s28 + $0x90] sm:$0xff] }
  0xa6   : > { %334 = vst [vmem:[#allocation2 + $0x78] sm:$0xf] %v2215_v0  ;;  %335 = vst [vmem:[#allocation2 + $0x80] sm:$0xff] %v2215_v0  ;;  %v420_v20 = vld [vmem:[%s2485_s28 + $0x98] sm:$0xff]  ;;  %v421_v21 = vld [vmem:[%s2485_s28 + $0xa0] sm:$0xff] }
  0xa7   : > { %336 = vst [vmem:[#allocation2 + $0x88] sm:$0xff] %v2215_v0  ;;  %337 = vst [vmem:[#allocation2 + $0x90] sm:$0xff] %v2215_v0  ;;  %v422_v22 = vld [vmem:[%s2485_s28 + $0xa8] sm:$0xff]  ;;  %v423_v23 = vld [vmem:[%s2485_s28 + $0xb0] sm:$0xff] }
  0xa8   : > { %338 = vst [vmem:[#allocation2 + $0x98] sm:$0xf] %v2215_v0  ;;  %339 = vst [vmem:[#allocation2 + $0xa0] sm:$0xff] %v2215_v0  ;;  %v424_v24 = vld [vmem:[%s2485_s28 + $0xb8] sm:$0xff]  ;;  %v425_v25 = vld [vmem:[%s2485_s28 + $0xc0] sm:$0xff] }
  0xa9   : > { %340 = vst [vmem:[#allocation2 + $0xa8] sm:$0xff] %v2215_v0  ;;  %341 = vst [vmem:[#allocation2 + $0xb0] sm:$0xff] %v2215_v0  ;;  %v426_v26 = vld [vmem:[%s2485_s28 + $0xc8] sm:$0xff]  ;;  %v427_v27 = vld [vmem:[%s2485_s28 + $0xd0] sm:$0xff] }
  0xaa   : > { %342 = vst [vmem:[#allocation2 + $0xb8] sm:$0xf] %v2215_v0  ;;  %344 = vst [vmem:[#allocation2 + $0x2c0] sm:$0xff] %v2215_v0  ;;  %v428_v28 = vld [vmem:[%s2485_s28 + $0xd8] sm:$0xff]  ;;  %v429_v29 = vld [vmem:[%s2485_s28 + $0xe0] sm:$0xff] }
  0xab   : > { %345 = vst [vmem:[#allocation2 + $0x2c8] sm:$0xff] %v2215_v0  ;;  %346 = vst [vmem:[#allocation2 + $0x2d0] sm:$0xff] %v2215_v0  ;;  %v430_v30 = vld [vmem:[%s2485_s28 + $0xe8] sm:$0xff]  ;;  %v431_v31 = vld [vmem:[%s2485_s28 + $0xf0] sm:$0xff] }
  0xac   : > { %347 = vst [vmem:[#allocation2 + $0x2d8] sm:$0xf] %v2215_v0  ;;  %348 = vst [vmem:[#allocation2 + $0x2e0] sm:$0xff] %v2215_v0  ;;  %v432_v32 = vld [vmem:[%s2485_s28 + $0xf8] sm:$0xff]  ;;  %v547_v33 = vld [vmem:[%s2493_s2] sm:$0xff] }
  0xad   : > { %349 = vst [vmem:[#allocation2 + $0x2e8] sm:$0xff] %v2215_v0  ;;  %350 = vst [vmem:[#allocation2 + $0x2f0] sm:$0xff] %v2215_v0  ;;  %v548_v34 = vld [vmem:[%s2493_s2 + $0x8] sm:$0xff]  ;;  %v549_v35 = vld [vmem:[%s2493_s2 + $0x10] sm:$0xff] }
  0xae   : > { %351 = vst [vmem:[#allocation2 + $0x2f8] sm:$0xf] %v2215_v0  ;;  %352 = vst [vmem:[#allocation2 + $0x300] sm:$0xff] %v2215_v0  ;;  %v550_v36 = vld [vmem:[%s2493_s2 + $0x18] sm:$0xff]  ;;  %v551_v37 = vld [vmem:[%s2493_s2 + $0x20] sm:$0xff] }
  0xaf   : > { %353 = vst [vmem:[#allocation2 + $0x308] sm:$0xff] %v2215_v0  ;;  %354 = vst [vmem:[#allocation2 + $0x310] sm:$0xff] %v2215_v0  ;;  %v552_v38 = vld [vmem:[%s2493_s2 + $0x28] sm:$0xff]  ;;  %v553_v39 = vld [vmem:[%s2493_s2 + $0x30] sm:$0xff] }
  0xb0   : > { %355 = vst [vmem:[#allocation2 + $0x318] sm:$0xf] %v2215_v0  ;;  %356 = vst [vmem:[#allocation2 + $0x320] sm:$0xff] %v2215_v0  ;;  %v554_v40 = vld [vmem:[%s2493_s2 + $0x38] sm:$0xff]  ;;  %v555_v41 = vld [vmem:[%s2493_s2 + $0x40] sm:$0xff] }
  0xb1   : > { %357 = vst [vmem:[#allocation2 + $0x328] sm:$0xff] %v2215_v0  ;;  %358 = vst [vmem:[#allocation2 + $0x330] sm:$0xff] %v2215_v0  ;;  %v556_v42 = vld [vmem:[%s2493_s2 + $0x48] sm:$0xff]  ;;  %v557_v43 = vld [vmem:[%s2493_s2 + $0x50] sm:$0xff] }
  0xb2   : > { %359 = vst [vmem:[#allocation2 + $0x338] sm:$0xf] %v2215_v0  ;;  %360 = vst [vmem:[#allocation2 + $0x340] sm:$0xff] %v2215_v0  ;;  %v558_v44 = vld [vmem:[%s2493_s2 + $0x58] sm:$0xff]  ;;  %v559_v45 = vld [vmem:[%s2493_s2 + $0x60] sm:$0xff] }
  0xb3   : > { %361 = vst [vmem:[#allocation2 + $0x348] sm:$0xff] %v2215_v0  ;;  %362 = vst [vmem:[#allocation2 + $0x350] sm:$0xff] %v2215_v0  ;;  %v560_v46 = vld [vmem:[%s2493_s2 + $0x68] sm:$0xff]  ;;  %v561_v47 = vld [vmem:[%s2493_s2 + $0x70] sm:$0xff] }
  0xb4   : > { %363 = vst [vmem:[#allocation2 + $0x358] sm:$0xf] %v2215_v0  ;;  %364 = vst [vmem:[#allocation2 + $0x360] sm:$0xff] %v2215_v0  ;;  %v562_v48 = vld [vmem:[%s2493_s2 + $0x78] sm:$0xff]  ;;  %v563_v49 = vld [vmem:[%s2493_s2 + $0x80] sm:$0xff] }
  0xb5   : > { %365 = vst [vmem:[#allocation2 + $0x368] sm:$0xff] %v2215_v0  ;;  %366 = vst [vmem:[#allocation2 + $0x370] sm:$0xff] %v2215_v0  ;;  %v564_v50 = vld [vmem:[%s2493_s2 + $0x88] sm:$0xff]  ;;  %v565_v51 = vld [vmem:[%s2493_s2 + $0x90] sm:$0xff] }
  0xb6   : > { %367 = vst [vmem:[#allocation2 + $0x378] sm:$0xf] %v2215_v0  ;;  %369 = vst [vmem:[#allocation2 + $0xc0] sm:$0x3f] %v2215_v0  ;;  %v566_v52 = vld [vmem:[%s2493_s2 + $0x98] sm:$0xff]  ;;  %v567_v53 = vld [vmem:[%s2493_s2 + $0xa0] sm:$0xff] }
  0xb7   : > { %370 = vst [vmem:[#allocation2 + $0xe0] sm:$0x3f] %v2215_v0  ;;  %371 = vst [vmem:[#allocation2 + $0x100] sm:$0x3f] %v2215_v0  ;;  %v568_v54 = vld [vmem:[%s2493_s2 + $0xa8] sm:$0xff]  ;;  %v569_v55 = vld [vmem:[%s2493_s2 + $0xb0] sm:$0xff] }
  0xb8   : > { %372 = vst [vmem:[#allocation2 + $0x120] sm:$0x3f] %v2215_v0  ;;  %373 = vst [vmem:[#allocation2 + $0x140] sm:$0x3f] %v2215_v0  ;;  %v570_v56 = vld [vmem:[%s2493_s2 + $0xb8] sm:$0xff]  ;;  %v571_v57 = vld [vmem:[%s2493_s2 + $0xc0] sm:$0xff] }
  0xb9   : > { %374 = vst [vmem:[#allocation2 + $0x160] sm:$0x3f] %v2215_v0  ;;  %375 = vst [vmem:[#allocation2 + $0x180] sm:$0x3f] %v2215_v0  ;;  %v572_v58 = vld [vmem:[%s2493_s2 + $0xc8] sm:$0xff]  ;;  %v573_v59 = vld [vmem:[%s2493_s2 + $0xd0] sm:$0xff] }
  0xba   : > { %376 = vst [vmem:[#allocation2 + $0x1a0] sm:$0x3f] %v2215_v0  ;;  %377 = vst [vmem:[#allocation2 + $0x1c0] sm:$0x3f] %v2215_v0  ;;  %v574_v60 = vld [vmem:[%s2493_s2 + $0xd8] sm:$0xff]  ;;  %v575_v61 = vld [vmem:[%s2493_s2 + $0xe0] sm:$0xff] }
  0xbb   : > { %378 = vst [vmem:[#allocation2 + $0x1e0] sm:$0x3f] %v2215_v0  ;;  %379 = vst [vmem:[#allocation2 + $0x200] sm:$0x3f] %v2215_v0  ;;  %v576_v62 = vld [vmem:[%s2493_s2 + $0xe8] sm:$0xff]  ;;  %v577_v63 = vld [vmem:[%s2493_s2 + $0xf0] sm:$0xff] }
  0xbc   : > { %380 = vst [vmem:[#allocation2 + $0x220] sm:$0x3f] %v2215_v0  ;;  %381 = vst [vmem:[#allocation2 + $0x240] sm:$0x3f] %v2215_v0 }
  0xbd   : > { %382 = vst [vmem:[#allocation2 + $0x260] sm:$0x3f] %v2215_v0  ;;  %383 = vst [vmem:[#allocation2 + $0x280] sm:$0x3f] %v2215_v0 }
  0xbe   : > { %384 = vst [vmem:[#allocation2 + $0x2a0] sm:$0x3f] %v2215_v0  ;;  %385 = vst [vmem:[#allocation2 + $0xd6] sm:$0x3f] %v2215_v0 }
  0xbf   : > { %386 = vst [vmem:[#allocation2 + $0xf6] sm:$0x3f] %v2215_v0  ;;  %387 = vst [vmem:[#allocation2 + $0x116] sm:$0x3f] %v2215_v0 }
  0xc0   : > { %388 = vst [vmem:[#allocation2 + $0x136] sm:$0x3f] %v2215_v0  ;;  %389 = vst [vmem:[#allocation2 + $0x156] sm:$0x3f] %v2215_v0 }
  0xc1   : > { %390 = vst [vmem:[#allocation2 + $0x176] sm:$0x3f] %v2215_v0  ;;  %391 = vst [vmem:[#allocation2 + $0x196] sm:$0x3f] %v2215_v0 }
  0xc2   : > { %392 = vst [vmem:[#allocation2 + $0x1b6] sm:$0x3f] %v2215_v0  ;;  %393 = vst [vmem:[#allocation2 + $0x1d6] sm:$0x3f] %v2215_v0 }
  0xc3   : > { %394 = vst [vmem:[#allocation2 + $0x1f6] sm:$0x3f] %v2215_v0  ;;  %395 = vst [vmem:[#allocation2 + $0x216] sm:$0x3f] %v2215_v0 }
  0xc4   : > { %396 = vst [vmem:[#allocation2 + $0x236] sm:$0x3f] %v2215_v0  ;;  %397 = vst [vmem:[#allocation2 + $0x256] sm:$0x3f] %v2215_v0 }
  0xc5   : > { %398 = vst [vmem:[#allocation2 + $0x276] sm:$0x3f] %v2215_v0  ;;  %399 = vst [vmem:[#allocation2 + $0x296] sm:$0x3f] %v2215_v0 }
  0xc6   : > { %400 = vst [vmem:[#allocation2 + $0x2b6] sm:$0x3f] %v2215_v0  ;;  %465 = vst [vmem:[#allocation3] sm:$0xff] %v2215_v0 }
  0xc7   : > { %466 = vst [vmem:[#allocation3 + $0x8] sm:$0xff] %v2215_v0  ;;  %467 = vst [vmem:[#allocation3 + $0x10] sm:$0xff] %v2215_v0 }
  0xc8   : > { %468 = vst [vmem:[#allocation3 + $0x18] sm:$0xf] %v2215_v0  ;;  %469 = vst [vmem:[#allocation3 + $0x20] sm:$0xff] %v2215_v0 }
  0xc9   : > { %470 = vst [vmem:[#allocation3 + $0x28] sm:$0xff] %v2215_v0  ;;  %471 = vst [vmem:[#allocation3 + $0x30] sm:$0xff] %v2215_v0 }
  0xca   : > { %472 = vst [vmem:[#allocation3 + $0x38] sm:$0xf] %v2215_v0  ;;  %473 = vst [vmem:[#allocation3 + $0x40] sm:$0xff] %v2215_v0 }
  0xcb   : > { %474 = vst [vmem:[#allocation3 + $0x48] sm:$0xff] %v2215_v0  ;;  %475 = vst [vmem:[#allocation3 + $0x50] sm:$0xff] %v2215_v0 }
  0xcc   : > { %476 = vst [vmem:[#allocation3 + $0x58] sm:$0xf] %v2215_v0  ;;  %477 = vst [vmem:[#allocation3 + $0x60] sm:$0xff] %v2215_v0 }
  0xcd   : > { %478 = vst [vmem:[#allocation3 + $0x68] sm:$0xff] %v2215_v0  ;;  %479 = vst [vmem:[#allocation3 + $0x70] sm:$0xff] %v2215_v0 }
  0xce   : > { %480 = vst [vmem:[#allocation3 + $0x78] sm:$0xf] %v2215_v0  ;;  %481 = vst [vmem:[#allocation3 + $0x80] sm:$0xff] %v2215_v0 }
  0xcf   : > { %482 = vst [vmem:[#allocation3 + $0x88] sm:$0xff] %v2215_v0  ;;  %483 = vst [vmem:[#allocation3 + $0x90] sm:$0xff] %v2215_v0 }
  0xd0   : > { %484 = vst [vmem:[#allocation3 + $0x98] sm:$0xf] %v2215_v0  ;;  %485 = vst [vmem:[#allocation3 + $0xa0] sm:$0xff] %v2215_v0 }
  0xd1   : > { %486 = vst [vmem:[#allocation3 + $0xa8] sm:$0xff] %v2215_v0  ;;  %487 = vst [vmem:[#allocation3 + $0xb0] sm:$0xff] %v2215_v0 }
  0xd2   : > { %488 = vst [vmem:[#allocation3 + $0xb8] sm:$0xf] %v2215_v0  ;;  %490 = vst [vmem:[#allocation3 + $0x2c0] sm:$0xff] %v2215_v0 }
  0xd3   : > { %491 = vst [vmem:[#allocation3 + $0x2c8] sm:$0xff] %v2215_v0  ;;  %492 = vst [vmem:[#allocation3 + $0x2d0] sm:$0xff] %v2215_v0 }
  0xd4   : > { %493 = vst [vmem:[#allocation3 + $0x2d8] sm:$0xf] %v2215_v0  ;;  %494 = vst [vmem:[#allocation3 + $0x2e0] sm:$0xff] %v2215_v0 }
  0xd5   : > { %495 = vst [vmem:[#allocation3 + $0x2e8] sm:$0xff] %v2215_v0  ;;  %496 = vst [vmem:[#allocation3 + $0x2f0] sm:$0xff] %v2215_v0 }
  0xd6   : > { %497 = vst [vmem:[#allocation3 + $0x2f8] sm:$0xf] %v2215_v0  ;;  %498 = vst [vmem:[#allocation3 + $0x300] sm:$0xff] %v2215_v0 }
  0xd7   : > { %499 = vst [vmem:[#allocation3 + $0x308] sm:$0xff] %v2215_v0  ;;  %500 = vst [vmem:[#allocation3 + $0x310] sm:$0xff] %v2215_v0 }
  0xd8   : > { %501 = vst [vmem:[#allocation3 + $0x318] sm:$0xf] %v2215_v0  ;;  %502 = vst [vmem:[#allocation3 + $0x320] sm:$0xff] %v2215_v0 }
  0xd9   : > { %503 = vst [vmem:[#allocation3 + $0x328] sm:$0xff] %v2215_v0  ;;  %504 = vst [vmem:[#allocation3 + $0x330] sm:$0xff] %v2215_v0 }
  0xda   : > { %505 = vst [vmem:[#allocation3 + $0x338] sm:$0xf] %v2215_v0  ;;  %506 = vst [vmem:[#allocation3 + $0x340] sm:$0xff] %v2215_v0 }
  0xdb   : > { %507 = vst [vmem:[#allocation3 + $0x348] sm:$0xff] %v2215_v0  ;;  %508 = vst [vmem:[#allocation3 + $0x350] sm:$0xff] %v2215_v0 }
  0xdc   : > { %509 = vst [vmem:[#allocation3 + $0x358] sm:$0xf] %v2215_v0  ;;  %510 = vst [vmem:[#allocation3 + $0x360] sm:$0xff] %v2215_v0 }
  0xdd   : > { %511 = vst [vmem:[#allocation3 + $0x368] sm:$0xff] %v2215_v0  ;;  %512 = vst [vmem:[#allocation3 + $0x370] sm:$0xff] %v2215_v0 }
  0xde   : > { %513 = vst [vmem:[#allocation3 + $0x378] sm:$0xf] %v2215_v0  ;;  %515 = vst [vmem:[#allocation3 + $0xc0] sm:$0x3f] %v2215_v0 }
  0xdf   : > { %516 = vst [vmem:[#allocation3 + $0xe0] sm:$0x3f] %v2215_v0  ;;  %517 = vst [vmem:[#allocation3 + $0x100] sm:$0x3f] %v2215_v0 }
  0xe0   : > { %518 = vst [vmem:[#allocation3 + $0x120] sm:$0x3f] %v2215_v0  ;;  %519 = vst [vmem:[#allocation3 + $0x140] sm:$0x3f] %v2215_v0 }
  0xe1   : > { %520 = vst [vmem:[#allocation3 + $0x160] sm:$0x3f] %v2215_v0  ;;  %521 = vst [vmem:[#allocation3 + $0x180] sm:$0x3f] %v2215_v0 }
  0xe2   : > { %522 = vst [vmem:[#allocation3 + $0x1a0] sm:$0x3f] %v2215_v0  ;;  %523 = vst [vmem:[#allocation3 + $0x1c0] sm:$0x3f] %v2215_v0 }
  0xe3   : > { %524 = vst [vmem:[#allocation3 + $0x1e0] sm:$0x3f] %v2215_v0  ;;  %525 = vst [vmem:[#allocation3 + $0x200] sm:$0x3f] %v2215_v0 }
  0xe4   : > { %526 = vst [vmem:[#allocation3 + $0x220] sm:$0x3f] %v2215_v0  ;;  %527 = vst [vmem:[#allocation3 + $0x240] sm:$0x3f] %v2215_v0 }
  0xe5   : > { %528 = vst [vmem:[#allocation3 + $0x260] sm:$0x3f] %v2215_v0  ;;  %529 = vst [vmem:[#allocation3 + $0x280] sm:$0x3f] %v2215_v0 }
  0xe6   : > { %530 = vst [vmem:[#allocation3 + $0x2a0] sm:$0x3f] %v2215_v0  ;;  %531 = vst [vmem:[#allocation3 + $0xd6] sm:$0x3f] %v2215_v0 }
  0xe7   : > { %532 = vst [vmem:[#allocation3 + $0xf6] sm:$0x3f] %v2215_v0  ;;  %533 = vst [vmem:[#allocation3 + $0x116] sm:$0x3f] %v2215_v0 }
  0xe8   : > { %534 = vst [vmem:[#allocation3 + $0x136] sm:$0x3f] %v2215_v0  ;;  %535 = vst [vmem:[#allocation3 + $0x156] sm:$0x3f] %v2215_v0 }
  0xe9   : > { %536 = vst [vmem:[#allocation3 + $0x176] sm:$0x3f] %v2215_v0  ;;  %537 = vst [vmem:[#allocation3 + $0x196] sm:$0x3f] %v2215_v0 }
  0xea   : > { %538 = vst [vmem:[#allocation3 + $0x1b6] sm:$0x3f] %v2215_v0  ;;  %539 = vst [vmem:[#allocation3 + $0x1d6] sm:$0x3f] %v2215_v0 }
  0xeb   : > { %540 = vst [vmem:[#allocation3 + $0x1f6] sm:$0x3f] %v2215_v0  ;;  %541 = vst [vmem:[#allocation3 + $0x216] sm:$0x3f] %v2215_v0 }
  0xec   : > { %542 = vst [vmem:[#allocation3 + $0x236] sm:$0x3f] %v2215_v0  ;;  %543 = vst [vmem:[#allocation3 + $0x256] sm:$0x3f] %v2215_v0 }
  0xed   : > { %544 = vst [vmem:[#allocation3 + $0x276] sm:$0x3f] %v2215_v0  ;;  %545 = vst [vmem:[#allocation3 + $0x296] sm:$0x3f] %v2215_v0 }
  0xee   : > { %546 = vst [vmem:[#allocation3 + $0x2b6] sm:$0x3f] %v2215_v0  ;;  %433 = vst [vmem:[#allocation2 + $0xc6] sm:$0xff] %v401_v1  ;;  %v578_v0 = vld [vmem:[%s2493_s2 + $0xf8] sm:$0xff] }
  0xef   : > { %434 = vst [vmem:[#allocation2 + $0xce] sm:$0xff] %v402_v2  ;;  %435 = vst [vmem:[#allocation2 + $0xe6] sm:$0xff] %v403_v3 }
  0xf0   : > { %436 = vst [vmem:[#allocation2 + $0xee] sm:$0xff] %v404_v4  ;;  %437 = vst [vmem:[#allocation2 + $0x106] sm:$0xff] %v405_v5 }
  0xf1   : > { %438 = vst [vmem:[#allocation2 + $0x10e] sm:$0xff] %v406_v6  ;;  %439 = vst [vmem:[#allocation2 + $0x126] sm:$0xff] %v407_v7 }
  0xf2   : > { %440 = vst [vmem:[#allocation2 + $0x12e] sm:$0xff] %v408_v8  ;;  %441 = vst [vmem:[#allocation2 + $0x146] sm:$0xff] %v409_v9 }
  0xf3   : > { %442 = vst [vmem:[#allocation2 + $0x14e] sm:$0xff] %v410_v10  ;;  %443 = vst [vmem:[#allocation2 + $0x166] sm:$0xff] %v411_v11 }
  0xf4   : > { %444 = vst [vmem:[#allocation2 + $0x16e] sm:$0xff] %v412_v12  ;;  %445 = vst [vmem:[#allocation2 + $0x186] sm:$0xff] %v413_v13 }
  0xf5   : > { %446 = vst [vmem:[#allocation2 + $0x18e] sm:$0xff] %v414_v14  ;;  %447 = vst [vmem:[#allocation2 + $0x1a6] sm:$0xff] %v415_v15 }
  0xf6   : > { %448 = vst [vmem:[#allocation2 + $0x1ae] sm:$0xff] %v416_v16  ;;  %449 = vst [vmem:[#allocation2 + $0x1c6] sm:$0xff] %v417_v17 }
  0xf7   : > { %450 = vst [vmem:[#allocation2 + $0x1ce] sm:$0xff] %v418_v18  ;;  %451 = vst [vmem:[#allocation2 + $0x1e6] sm:$0xff] %v419_v19 }
  0xf8   : > { %452 = vst [vmem:[#allocation2 + $0x1ee] sm:$0xff] %v420_v20  ;;  %453 = vst [vmem:[#allocation2 + $0x206] sm:$0xff] %v421_v21 }
  0xf9   : > { %454 = vst [vmem:[#allocation2 + $0x20e] sm:$0xff] %v422_v22  ;;  %455 = vst [vmem:[#allocation2 + $0x226] sm:$0xff] %v423_v23 }
  0xfa   : > { %456 = vst [vmem:[#allocation2 + $0x22e] sm:$0xff] %v424_v24  ;;  %457 = vst [vmem:[#allocation2 + $0x246] sm:$0xff] %v425_v25 }
  0xfb   : > { %458 = vst [vmem:[#allocation2 + $0x24e] sm:$0xff] %v426_v26  ;;  %459 = vst [vmem:[#allocation2 + $0x266] sm:$0xff] %v427_v27 }
  0xfc   : > { %460 = vst [vmem:[#allocation2 + $0x26e] sm:$0xff] %v428_v28  ;;  %461 = vst [vmem:[#allocation2 + $0x286] sm:$0xff] %v429_v29 }
  0xfd   : > { %462 = vst [vmem:[#allocation2 + $0x28e] sm:$0xff] %v430_v30  ;;  %463 = vst [vmem:[#allocation2 + $0x2a6] sm:$0xff] %v431_v31 }
  0xfe   : > { %464 = vst [vmem:[#allocation2 + $0x2ae] sm:$0xff] %v432_v32  ;;  %579 = vst [vmem:[#allocation3 + $0xc6] sm:$0xff] %v547_v33 }
  0xff   : > { %580 = vst [vmem:[#allocation3 + $0xce] sm:$0xff] %v548_v34  ;;  %581 = vst [vmem:[#allocation3 + $0xe6] sm:$0xff] %v549_v35 }
 0x100   : > { %582 = vst [vmem:[#allocation3 + $0xee] sm:$0xff] %v550_v36  ;;  %583 = vst [vmem:[#allocation3 + $0x106] sm:$0xff] %v551_v37 }
 0x101   : > { %584 = vst [vmem:[#allocation3 + $0x10e] sm:$0xff] %v552_v38  ;;  %585 = vst [vmem:[#allocation3 + $0x126] sm:$0xff] %v553_v39 }
 0x102   : > { %586 = vst [vmem:[#allocation3 + $0x12e] sm:$0xff] %v554_v40  ;;  %587 = vst [vmem:[#allocation3 + $0x146] sm:$0xff] %v555_v41 }
 0x103   : > { %588 = vst [vmem:[#allocation3 + $0x14e] sm:$0xff] %v556_v42  ;;  %589 = vst [vmem:[#allocation3 + $0x166] sm:$0xff] %v557_v43 }
 0x104   : > { %590 = vst [vmem:[#allocation3 + $0x16e] sm:$0xff] %v558_v44  ;;  %591 = vst [vmem:[#allocation3 + $0x186] sm:$0xff] %v559_v45 }
 0x105   : > { %592 = vst [vmem:[#allocation3 + $0x18e] sm:$0xff] %v560_v46  ;;  %593 = vst [vmem:[#allocation3 + $0x1a6] sm:$0xff] %v561_v47 }
 0x106   : > { %594 = vst [vmem:[#allocation3 + $0x1ae] sm:$0xff] %v562_v48  ;;  %595 = vst [vmem:[#allocation3 + $0x1c6] sm:$0xff] %v563_v49 }
 0x107   : > { %596 = vst [vmem:[#allocation3 + $0x1ce] sm:$0xff] %v564_v50  ;;  %597 = vst [vmem:[#allocation3 + $0x1e6] sm:$0xff] %v565_v51 }
 0x108   : > { %598 = vst [vmem:[#allocation3 + $0x1ee] sm:$0xff] %v566_v52  ;;  %599 = vst [vmem:[#allocation3 + $0x206] sm:$0xff] %v567_v53 }
 0x109   : > { %600 = vst [vmem:[#allocation3 + $0x20e] sm:$0xff] %v568_v54  ;;  %601 = vst [vmem:[#allocation3 + $0x226] sm:$0xff] %v569_v55 }
 0x10a   : > { %602 = vst [vmem:[#allocation3 + $0x22e] sm:$0xff] %v570_v56  ;;  %603 = vst [vmem:[#allocation3 + $0x246] sm:$0xff] %v571_v57 }
 0x10b   : > { %604 = vst [vmem:[#allocation3 + $0x24e] sm:$0xff] %v572_v58  ;;  %605 = vst [vmem:[#allocation3 + $0x266] sm:$0xff] %v573_v59 }
 0x10c   : > { %606 = vst [vmem:[#allocation3 + $0x26e] sm:$0xff] %v574_v60  ;;  %607 = vst [vmem:[#allocation3 + $0x286] sm:$0xff] %v575_v61 }
 0x10d   : > { %608 = vst [vmem:[#allocation3 + $0x28e] sm:$0xff] %v576_v62  ;;  %609 = vst [vmem:[#allocation3 + $0x2a6] sm:$0xff] %v577_v63 }
 0x10e   : > { %610 = vst [vmem:[#allocation3 + $0x2ae] sm:$0xff] %v578_v0 }
 0x10f LB: >> { %s1603_s13 = sshll.u32 %s2139_s23, 2  ;;  %v2738_v1 = vmov 0.0   ;;  %v2740_v2 = vmov 0.0   ;;  %v2742_v3 = vmov 0.0   ;;  %v2744_v4 = vmov 0.0   ;;  %s2770_s22 = smov 0   ;;  %s2139_s23 = sphi %s2732_s23, %s616_s23  }
 0x110   : >> { %v2746_v5 = vmov 0.0   ;;  %v2748_v6 = vmov 0.0   ;;  %v2750_v7 = vmov 0.0   ;;  %v2752_v8 = vmov 0.0  }
 0x111   : >> { %v2754_v9 = vmov 0.0   ;;  %v2756_v10 = vmov 0.0   ;;  %v2758_v11 = vmov 0.0   ;;  %v2760_v12 = vmov 0.0  }
 0x112   : >> { %v2762_v13 = vmov 0.0   ;;  %v2764_v14 = vmov 0.0   ;;  %v2766_v15 = vmov 0.0   ;;  %v2768_v16 = vmov 0.0  }
 0x113 LB: >>> { %s2814_s29 = sadd.s32 %s2207_s22, %s1603_s13  ;;  %s1604_s27 = sshll.u32 %s2207_s22, 4  ;;  %v667_v17 = vlaneseq  ;;  %s2207_s22 = sphi %s2770_s22, %s623_s22   ;;  %v2203_v16 = vphi %v2768_v16, %v3706_v16   ;;  %v2199_v15 = vphi %v2766_v15, %v3705_v15   ;;  %v2195_v14 = vphi %v2764_v14, %v3704_v14   ;;  %v2191_v13 = vphi %v2762_v13, %v3703_v13   ;;  %v2187_v12 = vphi %v2760_v12, %v3702_v12   ;;  %v2183_v11 = vphi %v2758_v11, %v3701_v11   ;;  %v2179_v10 = vphi %v2756_v10, %v3700_v10   ;;  %v2175_v9 = vphi %v2754_v9, %v3699_v9   ;;  %v2171_v8 = vphi %v2752_v8, %v3698_v8   ;;  %v2167_v7 = vphi %v2750_v7, %v3697_v7   ;;  %v2163_v6 = vphi %v2748_v6, %v3696_v6   ;;  %v2159_v5 = vphi %v2746_v5, %v3695_v5   ;;  %v2155_v4 = vphi %v2744_v4, %v3694_v4   ;;  %v2151_v3 = vphi %v2742_v3, %v3693_v3   ;;  %v2147_v2 = vphi %v2740_v2, %v3692_v2   ;;  %v2143_v1 = vphi %v2738_v1, %v3691_v1  }
 0x114   : >>> { %s1605_s5 = sshll.u32 %s2814_s29, 5  ;;  %s2820_s14 = scalar_lea.vmem [#allocation9], %s1604_s27 }
 0x115   : >>> { %v2818_v18 = vshrl.u32 %v667_v17, 7  ;;  %v2823_v19 = vld [vmem:[%s2820_s14] sm:$0xff]  ;;  %s2825_s6 = scalar_lea.vmem [#allocation10], %s1604_s27  ;;  %s2830_s3 = scalar_lea.vmem [#allocation2], %s1605_s5 }
 0x116   : >>> { %v2828_v20 = vld [vmem:[%s2825_s6] sm:$0xff]  ;;  %v2834_v22 = vld [vmem:[%s2830_s3 + $0x8] sm:$0xff]  ;;  %s2892_s30 = scalar_lea.vmem [#allocation3], %s1605_s5  ;;  %s623_s22 = sadd.s32 1, %s2207_s22  }
 0x117   : >>> { %v650_v21 = vld [vmem:[%s2830_s3] sm:$0xff]  ;;  %v2837_v23 = vsub.s32 0, %v2818_v18  ;;  %v2840_v24 = vsub.s32 1, %v2818_v18  ;;  %v2843_v25 = vsub.s32 2, %v2818_v18  ;;  %v2847_v27 = vld [vmem:[%s2830_s3 + $0x28] sm:$0xff]  ;;  %v2851_v29 = vsub.s32 3, %v2818_v18 }
 0x118   : >>> { %v652_v26 = vld [vmem:[%s2830_s3 + $0x20] sm:$0xff]  ;;  %v2854_v30 = vsub.s32 4, %v2818_v18  ;;  %v2858_v32 = vld [vmem:[%s2830_s3 + $0x48] sm:$0xff]  ;;  %p3437_p2 = scmp.ge.s32.totalorder %s623_s22, 13  }
 0x119   : >>> { %3614 = vst [vmem:[#allocation20_spill] sm:$0xff] %v2843_v25  ;;  %v654_v28 = vld [vmem:[%s2830_s3 + $0x40] sm:$0xff]  ;;  %3615 = vst [vmem:[#allocation21_spill] sm:$0xff] %v2851_v29  ;;  %v2862_v34 = vld [vmem:[%s2830_s3 + $0x68] sm:$0xff]  ;;  %v670_v35 = vrot.slane %v2823_v19, %v2837_v23  ;;  %v690_v36 = vrot.slane %v2828_v20, %v2837_v23  ;;  %v2870_v37 = vrot.slane %v2823_v19, %v2840_v24  ;;  %s1614_s11 = sshll.u32 (%p3437_p2), %s2139_s23, 6  ;;  %s616_s23 = sadd.s32 (%p3437_p2), 1, %s2139_s23  }
 0x11a   : >>> { %3616 = vst [vmem:[#allocation22_spill] sm:$0xff] %v2854_v30  ;;  %v656_v33 = vld [vmem:[%s2830_s3 + $0x60] sm:$0xff]  ;;  %v2874_v38 = vrot.slane %v2828_v20, %v2840_v24  ;;  %v2878_v39 = vrot.slane %v2823_v19, %v2843_v25  ;;  %v2882_v40 = vrot.slane %v2828_v20, %v2843_v25  ;;  %v2886_v41 = vrot.slane %v2823_v19, %v2851_v29  ;;  %v2896_v44 = vld [vmem:[%s2892_s30 + $0x8] sm:$0xff]  ;;  %s1356_s0 = scalar_lea.vmem (%p3437_p2), %s318_s21, %s1614_s11 [#allocation12]  ;;  %p613_p6 = scmp.ge.s32.totalorder (%p3437_p2), %s616_s23, 4  }
 0x11b   : >>> { %v2890_v42 = vrot.slane %v2828_v20, %v2851_v29  ;;  %v659_v43 = vld [vmem:[%s2892_s30] sm:$0xff]  ;;  %v671_v45 = vmul.f32 %v670_v35, %v650_v21  ;;  %v672_v46 = vmul.f32 %v670_v35, %v2834_v22  ;;  %v673_v47 = vmul.f32 %v670_v35, %v652_v26  ;;  %v2902_v50 = vld [vmem:[%s2892_s30 + $0x28] sm:$0xff] }
 0x11c   : >>> { %v674_v48 = vmul.f32 %v670_v35, %v2847_v27  ;;  %v661_v49 = vld [vmem:[%s2892_s30 + $0x20] sm:$0xff]  ;;  %v675_v52 = vmul.f32 %v670_v35, %v654_v28  ;;  %v676_v53 = vmul.f32 %v670_v35, %v2858_v32  ;;  %v677_v54 = vmul.f32 %v670_v35, %v656_v33  ;;  %v2908_v56 = vld [vmem:[%s2892_s30 + $0x48] sm:$0xff] }
 0x11d   : >>> { %v663_v51 = vld [vmem:[%s2892_s30 + $0x40] sm:$0xff]  ;;  %v678_v55 = vmul.f32 %v670_v35, %v2862_v34  ;;  %v2912_v58 = vld [vmem:[%s2892_s30 + $0x68] sm:$0xff]  ;;  %v679_v59 = vadd.f32 %v2203_v16, %v671_v45  ;;  %v680_v60 = vadd.f32 %v2199_v15, %v672_v46  ;;  %v681_v61 = vadd.f32 %v2195_v14, %v673_v47 }
 0x11e   : >>> { %v665_v57 = vld [vmem:[%s2892_s30 + $0x60] sm:$0xff]  ;;  %v682_v62 = vadd.f32 %v2191_v13, %v674_v48  ;;  %v683_v63 = vadd.f32 %v2187_v12, %v675_v52  ;;  %v684_v0 = vadd.f32 %v2183_v11, %v676_v53  ;;  %v685_v17 = vadd.f32 %v2179_v10, %v677_v54  ;;  %v2920_v15 = vld [vmem:[%s2830_s3 + $0x9] sm:$0xff] }
 0x11f   : >>> { %v686_v21 = vadd.f32 %v2175_v9, %v678_v55  ;;  %v691_v26 = vmul.f32 %v690_v36, %v659_v43  ;;  %v692_v28 = vmul.f32 %v690_v36, %v2896_v44  ;;  %v693_v33 = vmul.f32 %v690_v36, %v661_v49  ;;  %v707_v14 = vld [vmem:[%s2830_s3 + $0x1] sm:$0xff]  ;;  %3617 = vst [vmem:[#allocation23_spill] sm:$0xff] %v2920_v15  ;;  %v2926_v35 = vld [vmem:[%s2830_s3 + $0x29] sm:$0xff] }
 0x120   : >>> { %v694_v16 = vmul.f32 %v690_v36, %v2902_v50  ;;  %v695_v13 = vmul.f32 %v690_v36, %v663_v51  ;;  %v696_v12 = vmul.f32 %v690_v36, %v2908_v56  ;;  %v697_v11 = vmul.f32 %v690_v36, %v665_v57  ;;  %v709_v9 = vld [vmem:[%s2830_s3 + $0x21] sm:$0xff]  ;;  %3618 = vst [vmem:[#allocation24_spill] sm:$0xff] %v2926_v35  ;;  %v2934_v49 = vld [vmem:[%s2830_s3 + $0x49] sm:$0xff] }
 0x121   : >>> { %v698_v10 = vmul.f32 %v690_v36, %v2912_v58  ;;  %v711_v43 = vld [vmem:[%s2830_s3 + $0x41] sm:$0xff]  ;;  %v699_v45 = vadd.f32 %v2171_v8, %v691_v26  ;;  %v700_v46 = vadd.f32 %v2167_v7, %v692_v28  ;;  %v701_v47 = vadd.f32 %v2163_v6, %v693_v33  ;;  %3619 = vst [vmem:[#allocation25_spill] sm:$0xff] %v2934_v49  ;;  %v2938_v36 = vld [vmem:[%s2830_s3 + $0x69] sm:$0xff] }
 0x122   : >>> { %v702_v48 = vadd.f32 %v2159_v5, %v694_v16  ;;  %v713_v51 = vld [vmem:[%s2830_s3 + $0x61] sm:$0xff]  ;;  %3620 = vst [vmem:[#allocation26_spill] sm:$0xff] %v2938_v36  ;;  %v703_v52 = vadd.f32 %v2155_v4, %v695_v13  ;;  %v704_v53 = vadd.f32 %v2151_v3, %v696_v12  ;;  %v705_v8 = vadd.f32 %v2147_v2, %v697_v11  ;;  %v2946_v54 = vld [vmem:[%s2892_s30 + $0x9] sm:$0xff] }
 0x123   : >>> { %v706_v7 = vadd.f32 %v2143_v1, %v698_v10  ;;  %v715_v6 = vld [vmem:[%s2892_s30 + $0x1] sm:$0xff]  ;;  %3621 = vst [vmem:[#allocation27_spill] sm:$0xff] %v2946_v54  ;;  %v727_v5 = vmul.f32 %v2870_v37, %v707_v14  ;;  %v728_v55 = vmul.f32 %v2870_v37, %v2920_v15  ;;  %v729_v57 = vmul.f32 %v2870_v37, %v709_v9  ;;  %v2956_v26 = vld [vmem:[%s2892_s30 + $0x29] sm:$0xff] }
 0x124   : >>> { %v730_v3 = vmul.f32 %v2870_v37, %v2926_v35  ;;  %v717_v4 = vld [vmem:[%s2892_s30 + $0x21] sm:$0xff]  ;;  %3622 = vst [vmem:[#allocation28_spill] sm:$0xff] %v2956_v26  ;;  %v731_v1 = vmul.f32 %v2870_v37, %v711_v43  ;;  %v732_v28 = vmul.f32 %v2870_v37, %v2934_v49  ;;  %v733_v33 = vmul.f32 %v2870_v37, %v713_v51  ;;  %v2966_v14 = vld [vmem:[%s2892_s30 + $0x49] sm:$0xff] }
 0x125   : >>> { %v719_v2 = vld [vmem:[%s2892_s30 + $0x41] sm:$0xff]  ;;  %v734_v16 = vmul.f32 %v2870_v37, %v2938_v36  ;;  %3623 = vst [vmem:[#allocation29_spill] sm:$0xff] %v2966_v14  ;;  %v2970_v12 = vld [vmem:[%s2892_s30 + $0x69] sm:$0xff]  ;;  %v735_v11 = vadd.f32 %v727_v5, %v679_v59  ;;  %v736_v10 = vadd.f32 %v728_v55, %v680_v60  ;;  %v737_v9 = vadd.f32 %v729_v57, %v681_v61 }
 0x126   : >>> { %v721_v13 = vld [vmem:[%s2892_s30 + $0x61] sm:$0xff]  ;;  %3624 = vst [vmem:[#allocation30_spill] sm:$0xff] %v2970_v12  ;;  %v738_v43 = vadd.f32 %v730_v3, %v682_v62  ;;  %v739_v31 = vadd.f32 %v731_v1, %v683_v63  ;;  %v740_v49 = vadd.f32 %v732_v28, %v684_v0  ;;  %v741_v51 = vadd.f32 %v733_v33, %v685_v17  ;;  %v2980_v61 = vld [vmem:[%s2830_s3 + $0xa] sm:$0xff] }
 0x127   : >>> { %v742_v35 = vadd.f32 %v734_v16, %v686_v21  ;;  %v747_v37 = vmul.f32 %v2874_v38, %v715_v6  ;;  %v748_v36 = vmul.f32 %v2874_v38, %v2946_v54  ;;  %v749_v15 = vmul.f32 %v2874_v38, %v717_v4  ;;  %v763_v60 = vld [vmem:[%s2830_s3 + $0x2] sm:$0xff]  ;;  %3625 = vst [vmem:[#allocation31_spill] sm:$0xff] %v2980_v61  ;;  %v2990_v6 = vld [vmem:[%s2830_s3 + $0x2a] sm:$0xff] }
 0x128   : >>> { %v750_v59 = vmul.f32 %v2874_v38, %v2956_v26  ;;  %v751_v62 = vmul.f32 %v2874_v38, %v719_v2  ;;  %v752_v63 = vmul.f32 %v2874_v38, %v2966_v14  ;;  %v753_v0 = vmul.f32 %v2874_v38, %v721_v13  ;;  %v765_v21 = vld [vmem:[%s2830_s3 + $0x22] sm:$0xff]  ;;  %3626 = vst [vmem:[#allocation32_spill] sm:$0xff] %v2990_v6  ;;  %v2994_v2 = vld [vmem:[%s2830_s3 + $0x4a] sm:$0xff] }
 0x129   : >>> { %v754_v17 = vmul.f32 %v2874_v38, %v2970_v12  ;;  %v767_v5 = vld [vmem:[%s2830_s3 + $0x42] sm:$0xff]  ;;  %v755_v55 = vadd.f32 %v747_v37, %v699_v45  ;;  %v756_v57 = vadd.f32 %v748_v36, %v700_v46  ;;  %v757_v3 = vadd.f32 %v749_v15, %v701_v47  ;;  %3627 = vst [vmem:[#allocation33_spill] sm:$0xff] %v2994_v2  ;;  %v2998_v28 = vld [vmem:[%s2830_s3 + $0x6a] sm:$0xff] }
 0x12a   : >>> { %v758_v4 = vadd.f32 %v750_v59, %v702_v48  ;;  %v769_v1 = vld [vmem:[%s2830_s3 + $0x62] sm:$0xff]  ;;  %3628 = vst [vmem:[#allocation34_spill] sm:$0xff] %v2998_v28  ;;  %v759_v33 = vadd.f32 %v751_v62, %v703_v52  ;;  %v760_v16 = vadd.f32 %v752_v63, %v704_v53  ;;  %v761_v38 = vadd.f32 %v753_v0, %v705_v8  ;;  %v3002_v45 = vld [vmem:[%s2892_s30 + $0xa] sm:$0xff] }
 0x12b   : >>> { %v762_v13 = vadd.f32 %v754_v17, %v706_v7  ;;  %v771_v12 = vld [vmem:[%s2892_s30 + $0x2] sm:$0xff]  ;;  %3629 = vst [vmem:[#allocation35_spill] sm:$0xff] %v3002_v45  ;;  %v783_v15 = vmul.f32 %v2878_v39, %v763_v60  ;;  %v784_v46 = vmul.f32 %v2878_v39, %v2980_v61  ;;  %v785_v47 = vmul.f32 %v2878_v39, %v765_v21  ;;  %v3012_v52 = vld [vmem:[%s2892_s30 + $0x2a] sm:$0xff] }
 0x12c   : >>> { %v786_v48 = vmul.f32 %v2878_v39, %v2990_v6  ;;  %v773_v36 = vld [vmem:[%s2892_s30 + $0x22] sm:$0xff]  ;;  %3630 = vst [vmem:[#allocation36_spill] sm:$0xff] %v3012_v52  ;;  %v787_v8 = vmul.f32 %v2878_v39, %v767_v5  ;;  %v788_v7 = vmul.f32 %v2878_v39, %v2994_v2  ;;  %v789_v37 = vmul.f32 %v2878_v39, %v769_v1  ;;  %v3022_v60 = vld [vmem:[%s2892_s30 + $0x4a] sm:$0xff] }
 0x12d   : >>> { %v775_v53 = vld [vmem:[%s2892_s30 + $0x42] sm:$0xff]  ;;  %v790_v59 = vmul.f32 %v2878_v39, %v2998_v28  ;;  %3631 = vst [vmem:[#allocation37_spill] sm:$0xff] %v3022_v60  ;;  %v3026_v63 = vld [vmem:[%s2892_s30 + $0x6a] sm:$0xff]  ;;  %v791_v0 = vadd.f32 %v783_v15, %v735_v11  ;;  %v792_v17 = vadd.f32 %v784_v46, %v736_v10  ;;  %v793_v21 = vadd.f32 %v785_v47, %v737_v9 }
 0x12e   : >>> { %v777_v62 = vld [vmem:[%s2892_s30 + $0x62] sm:$0xff]  ;;  %3632 = vst [vmem:[#allocation38_spill] sm:$0xff] %v3026_v63  ;;  %v794_v5 = vadd.f32 %v786_v48, %v738_v43  ;;  %v795_v6 = vadd.f32 %v787_v8, %v739_v31  ;;  %v796_v2 = vadd.f32 %v788_v7, %v740_v49  ;;  %v797_v1 = vadd.f32 %v789_v37, %v741_v51  ;;  %v3036_v9 = vld [vmem:[%s2830_s3 + $0xb] sm:$0xff] }
 0x12f   : >>> { %v798_v61 = vadd.f32 %v790_v59, %v742_v35  ;;  %v803_v39 = vmul.f32 %v2882_v40, %v771_v12  ;;  %v804_v28 = vmul.f32 %v2882_v40, %v3002_v45  ;;  %v805_v14 = vmul.f32 %v2882_v40, %v773_v36  ;;  %v819_v10 = vld [vmem:[%s2830_s3 + $0x3] sm:$0xff]  ;;  %3633 = vst [vmem:[#allocation39_spill] sm:$0xff] %v3036_v9  ;;  %v3046_v51 = vld [vmem:[%s2830_s3 + $0x2b] sm:$0xff] }
 0x130   : >>> { %v806_v11 = vmul.f32 %v2882_v40, %v3012_v52  ;;  %v807_v31 = vmul.f32 %v2882_v40, %v775_v53  ;;  %v808_v35 = vmul.f32 %v2882_v40, %v3022_v60  ;;  %v809_v49 = vmul.f32 %v2882_v40, %v777_v62  ;;  %v821_v43 = vld [vmem:[%s2830_s3 + $0x23] sm:$0xff]  ;;  %3634 = vst [vmem:[#allocation40_spill] sm:$0xff] %v3046_v51  ;;  %v3050_v53 = vld [vmem:[%s2830_s3 + $0x4b] sm:$0xff] }
 0x131   : >>> { %v810_v12 = vmul.f32 %v2882_v40, %v3026_v63  ;;  %v823_v15 = vld [vmem:[%s2830_s3 + $0x43] sm:$0xff]  ;;  %v811_v46 = vadd.f32 %v803_v39, %v755_v55  ;;  %v812_v47 = vadd.f32 %v804_v28, %v756_v57  ;;  %v813_v48 = vadd.f32 %v805_v14, %v757_v3  ;;  %3635 = vst [vmem:[#allocation41_spill] sm:$0xff] %v3050_v53  ;;  %v3054_v7 = vld [vmem:[%s2830_s3 + $0x6b] sm:$0xff] }
 0x132   : >>> { %v814_v36 = vadd.f32 %v806_v11, %v758_v4  ;;  %v825_v8 = vld [vmem:[%s2830_s3 + $0x63] sm:$0xff]  ;;  %3636 = vst [vmem:[#allocation42_spill] sm:$0xff] %v3054_v7  ;;  %v815_v37 = vadd.f32 %v807_v31, %v759_v33  ;;  %v816_v59 = vadd.f32 %v808_v35, %v760_v16  ;;  %v817_v40 = vadd.f32 %v809_v49, %v761_v38  ;;  %v3058_v55 = vld [vmem:[%s2892_s30 + $0xb] sm:$0xff] }
 0x133   : >>> { %v818_v62 = vadd.f32 %v810_v12, %v762_v13  ;;  %v827_v63 = vld [vmem:[%s2892_s30 + $0x3] sm:$0xff]  ;;  %3637 = vst [vmem:[#allocation43_spill] sm:$0xff] %v3058_v55  ;;  %v839_v14 = vmul.f32 %v2886_v41, %v819_v10  ;;  %v840_v57 = vmul.f32 %v2886_v41, %v3036_v9  ;;  %v841_v3 = vmul.f32 %v2886_v41, %v821_v43  ;;  %v3068_v33 = vld [vmem:[%s2892_s30 + $0x2b] sm:$0xff] }
 0x134   : >>> { %v842_v4 = vmul.f32 %v2886_v41, %v3046_v51  ;;  %v829_v28 = vld [vmem:[%s2892_s30 + $0x23] sm:$0xff]  ;;  %3638 = vst [vmem:[#allocation44_spill] sm:$0xff] %v3068_v33  ;;  %v843_v38 = vmul.f32 %v2886_v41, %v823_v15  ;;  %v844_v13 = vmul.f32 %v2886_v41, %v3050_v53  ;;  %v845_v39 = vmul.f32 %v2886_v41, %v825_v8  ;;  %v3078_v10 = vld [vmem:[%s2892_s30 + $0x4b] sm:$0xff] }
 0x135   : >>> { %v831_v16 = vld [vmem:[%s2892_s30 + $0x43] sm:$0xff]  ;;  %v846_v11 = vmul.f32 %v2886_v41, %v3054_v7  ;;  %3639 = vst [vmem:[#allocation45_spill] sm:$0xff] %v3078_v10  ;;  %v3082_v35 = vld [vmem:[%s2892_s30 + $0x6b] sm:$0xff]  ;;  %v847_v49 = vadd.f32 %v839_v14, %v791_v0  ;;  %v848_v12 = vadd.f32 %v840_v57, %v792_v17  ;;  %v849_v43 = vadd.f32 %v841_v3, %v793_v21 }
 0x136   : >>> { %v833_v31 = vld [vmem:[%s2892_s30 + $0x63] sm:$0xff]  ;;  %3640 = vst [vmem:[#allocation46_spill] sm:$0xff] %v3082_v35  ;;  %v850_v51 = vadd.f32 %v842_v4, %v794_v5  ;;  %v851_v15 = vadd.f32 %v843_v38, %v795_v6  ;;  %v852_v9 = vadd.f32 %v844_v13, %v796_v2  ;;  %v853_v60 = vadd.f32 %v845_v39, %v797_v1  ;;  %v3104_v4 = vld [vmem:[%s2830_s3 + $0xc] sm:$0xff] }
 0x137   : >>> { %v854_v53 = vadd.f32 %v846_v11, %v798_v61  ;;  %v859_v8 = vmul.f32 %v2890_v42, %v827_v63  ;;  %v860_v41 = vmul.f32 %v2890_v42, %v3058_v55  ;;  %v861_v7 = vmul.f32 %v2890_v42, %v829_v28  ;;  %v3091_v17 = vld [vmem:[%s2820_s14 + $0x8] sm:$0x1f]  ;;  %3641 = vst [vmem:[#allocation47_spill] sm:$0xff] %v3104_v4  ;;  %v1044_v25 = vld [vmem:[%s2830_s3 + $0xf] sm:$0xff] }
 0x138   : >>> { %v862_v0 = vmul.f32 %v2890_v42, %v3068_v33  ;;  %v863_v6 = vmul.f32 %v2890_v42, %v831_v16  ;;  %v864_v61 = vmul.f32 %v2890_v42, %v3078_v10  ;;  %v865_v2 = vmul.f32 %v2890_v42, %v833_v31  ;;  %v3100_v21 = vld [vmem:[%s2825_s6 + $0x8] sm:$0x1f] }
 0x139   : >>> { %v866_v63 = vmul.f32 %v2890_v42, %v3082_v35  ;;  %v867_v5 = vadd.f32 %v859_v8, %v811_v46  ;;  %v868_v1 = vadd.f32 %v860_v41, %v812_v47  ;;  %v869_v14 = vadd.f32 %v861_v7, %v813_v48  ;;  %v875_v3 = vld [vmem:[%s2830_s3 + $0x4] sm:$0xff]  ;;  %v3108_v11 = vld [vmem:[%s2830_s3 + $0x2c] sm:$0xff] }
 0x13a   : >>> { %v870_v57 = vadd.f32 %v862_v0, %v814_v36  ;;  %v871_v28 = vadd.f32 %v863_v6, %v815_v37  ;;  %v872_v16 = vadd.f32 %v864_v61, %v816_v59  ;;  %v873_v38 = vadd.f32 %v865_v2, %v817_v40  ;;  %v877_v39 = vld [vmem:[%s2830_s3 + $0x24] sm:$0xff]  ;;  %3642 = vst [vmem:[#allocation48_spill] sm:$0xff] %v3108_v11  ;;  %v3112_v31 = vld [vmem:[%s2830_s3 + $0x4c] sm:$0xff] }
 0x13b   : >>> { %v874_v13 = vadd.f32 %v866_v63, %v818_v62  ;;  %v879_v42 = vld [vmem:[%s2830_s3 + $0x44] sm:$0xff]  ;;  %3643 = vst [vmem:[#allocation49_spill] sm:$0xff] %v3112_v31  ;;  %v3116_v46 = vld [vmem:[%s2830_s3 + $0x6c] sm:$0xff]  ;;  %v894_v47 = vrot.slane %v2823_v19, %v2854_v30  ;;  %v914_v48 = vrot.slane %v2828_v20, %v2854_v30  ;;  %v3645_v36 = vsub.s32 5, %v2818_v18 }
 0x13c   : >>> { %v881_v35 = vld [vmem:[%s2830_s3 + $0x64] sm:$0xff]  ;;  %3644 = vst [vmem:[#allocation50_spill] sm:$0xff] %v3116_v46  ;;  %v3136_v8 = vrot.slane %v3091_v17, %v2837_v23  ;;  %v3140_v41 = vrot.slane %v3100_v21, %v2837_v23  ;;  %v3144_v6 = vld [vmem:[%s2892_s30 + $0xc] sm:$0xff] }
 0x13d   : >>> { %v3125_v7 = vrot.slane %v2823_v19, %v3645_v36  ;;  %v3646_v37 = vmov %v3645_v36  ;;  %v883_v0 = vld [vmem:[%s2892_s30 + $0x4] sm:$0xff]  ;;  %3647 = vst [vmem:[#allocation51_spill] sm:$0xff] %v3144_v6  ;;  %v895_v61 = vmul.f32 %v894_v47, %v875_v3  ;;  %v896_v2 = vmul.f32 %v894_v47, %v3104_v4  ;;  %v3150_v62 = vld [vmem:[%s2892_s30 + $0x2c] sm:$0xff] }
 0x13e   : >>> { %v3130_v59 = vrot.slane %v2828_v20, %v3646_v37  ;;  %v897_v63 = vmul.f32 %v894_v47, %v877_v39  ;;  %v898_v36 = vmul.f32 %v894_v47, %v3108_v11  ;;  %v885_v37 = vld [vmem:[%s2892_s30 + $0x24] sm:$0xff]  ;;  %3648 = vst [vmem:[#allocation52_spill] sm:$0xff] %v3150_v62  ;;  %v899_v10 = vmul.f32 %v894_v47, %v879_v42  ;;  %v3156_v52 = vld [vmem:[%s2892_s30 + $0x4c] sm:$0xff] }
 0x13f   : >>> { %v887_v40 = vld [vmem:[%s2892_s30 + $0x44] sm:$0xff]  ;;  %v900_v33 = vmul.f32 %v894_v47, %v3112_v31  ;;  %v901_v55 = vmul.f32 %v894_v47, %v881_v35  ;;  %v902_v23 = vmul.f32 %v894_v47, %v3116_v46  ;;  %3649 = vst [vmem:[#allocation53_spill] sm:$0xff] %v3156_v52  ;;  %v3160_v45 = vld [vmem:[%s2892_s30 + $0x6c] sm:$0xff]  ;;  %v903_v39 = vadd.f32 %v895_v61, %v847_v49 }
 0x140   : >>> { %v889_v3 = vld [vmem:[%s2892_s30 + $0x64] sm:$0xff]  ;;  %3650 = vst [vmem:[#allocation54_spill] sm:$0xff] %v3160_v45  ;;  %v904_v4 = vadd.f32 %v896_v2, %v848_v12  ;;  %v905_v11 = vadd.f32 %v897_v63, %v849_v43  ;;  %v906_v26 = vadd.f32 %v898_v36, %v850_v51  ;;  %v907_v54 = vadd.f32 %v899_v10, %v851_v15  ;;  %v932_v12 = vld [vmem:[%s2830_s3 + $0xd] sm:$0xff] }
 0x141   : >>> { %v908_v42 = vadd.f32 %v900_v33, %v852_v9  ;;  %v909_v31 = vadd.f32 %v901_v55, %v853_v60  ;;  %v910_v35 = vadd.f32 %v902_v23, %v854_v53  ;;  %v915_v30 = vmul.f32 %v914_v48, %v883_v0  ;;  %v931_v49 = vld [vmem:[%s2830_s3 + $0x5] sm:$0xff]  ;;  %v934_v53 = vld [vmem:[%s2830_s3 + $0x2d] sm:$0xff] }
 0x142   : >>> { %v916_v47 = vmul.f32 %v914_v48, %v3144_v6  ;;  %v917_v46 = vmul.f32 %v914_v48, %v885_v37  ;;  %v918_v29 = vmul.f32 %v914_v48, %v3150_v62  ;;  %v919_v43 = vmul.f32 %v914_v48, %v887_v40  ;;  %v933_v60 = vld [vmem:[%s2830_s3 + $0x25] sm:$0xff]  ;;  %v936_v2 = vld [vmem:[%s2830_s3 + $0x4d] sm:$0xff] }
 0x143   : >>> { %v920_v51 = vmul.f32 %v914_v48, %v3156_v52  ;;  %v921_v61 = vmul.f32 %v914_v48, %v889_v3  ;;  %v922_v9 = vmul.f32 %v914_v48, %v3160_v45  ;;  %v935_v55 = vld [vmem:[%s2830_s3 + $0x45] sm:$0xff]  ;;  %v923_v33 = vadd.f32 %v915_v30, %v867_v5  ;;  %v938_v40 = vld [vmem:[%s2830_s3 + $0x6d] sm:$0xff] }
 0x144   : >>> { %v924_v10 = vadd.f32 %v916_v47, %v868_v1  ;;  %v925_v15 = vadd.f32 %v917_v46, %v869_v14  ;;  %v926_v0 = vadd.f32 %v918_v29, %v870_v57  ;;  %v937_v63 = vld [vmem:[%s2830_s3 + $0x65] sm:$0xff]  ;;  %v927_v36 = vadd.f32 %v919_v43, %v871_v28  ;;  %v940_v45 = vld [vmem:[%s2892_s30 + $0xd] sm:$0xff] }
 0x145   : >>> { %v928_v37 = vadd.f32 %v920_v51, %v872_v16  ;;  %v929_v23 = vadd.f32 %v921_v61, %v873_v38  ;;  %v930_v48 = vadd.f32 %v922_v9, %v874_v13  ;;  %v939_v3 = vld [vmem:[%s2892_s30 + $0x5] sm:$0xff]  ;;  %v951_v30 = vmul.f32 %v3125_v7, %v931_v49  ;;  %v942_v57 = vld [vmem:[%s2892_s30 + $0x2d] sm:$0xff] }
 0x146   : >>> { %v952_v5 = vmul.f32 %v3125_v7, %v932_v12  ;;  %v953_v1 = vmul.f32 %v3125_v7, %v933_v60  ;;  %v954_v29 = vmul.f32 %v3125_v7, %v934_v53  ;;  %v941_v14 = vld [vmem:[%s2892_s30 + $0x25] sm:$0xff]  ;;  %v955_v28 = vmul.f32 %v3125_v7, %v935_v55  ;;  %v944_v47 = vld [vmem:[%s2892_s30 + $0x4d] sm:$0xff] }
 0x147   : >>> { %v943_v46 = vld [vmem:[%s2892_s30 + $0x45] sm:$0xff]  ;;  %v956_v16 = vmul.f32 %v3125_v7, %v936_v2  ;;  %v957_v38 = vmul.f32 %v3125_v7, %v937_v63  ;;  %v958_v13 = vmul.f32 %v3125_v7, %v938_v40  ;;  %v946_v49 = vld [vmem:[%s2892_s30 + $0x6d] sm:$0xff]  ;;  %v959_v51 = vadd.f32 %v951_v30, %v903_v39 }
 0x148   : >>> { %v945_v43 = vld [vmem:[%s2892_s30 + $0x65] sm:$0xff]  ;;  %v960_v12 = vadd.f32 %v952_v5, %v904_v4  ;;  %v961_v61 = vadd.f32 %v953_v1, %v905_v11  ;;  %v962_v9 = vadd.f32 %v954_v29, %v906_v26  ;;  %v963_v60 = vadd.f32 %v955_v28, %v907_v54  ;;  %v1099_v30 = vld [vmem:[%s2830_s3 + $0x10] sm:$0xff] }
 0x149   : >>> { %v964_v53 = vadd.f32 %v956_v16, %v908_v42  ;;  %v965_v52 = vadd.f32 %v957_v38, %v909_v31  ;;  %v966_v55 = vadd.f32 %v958_v13, %v910_v35  ;;  %v971_v2 = vmul.f32 %v3130_v59, %v939_v3  ;;  %v987_v11 = vld [vmem:[%s2830_s3 + $0x6] sm:$0xff]  ;;  %v988_v3 = vld [vmem:[%s2830_s3 + $0xe] sm:$0xff] }
 0x14a   : >>> { %v972_v63 = vmul.f32 %v3130_v59, %v940_v45  ;;  %v973_v7 = vmul.f32 %v3130_v59, %v941_v14  ;;  %v974_v40 = vmul.f32 %v3130_v59, %v942_v57  ;;  %v975_v39 = vmul.f32 %v3130_v59, %v943_v46  ;;  %v1100_v5 = vld [vmem:[%s2830_s3 + $0x30] sm:$0xff]  ;;  %v989_v46 = vld [vmem:[%s2830_s3 + $0x26] sm:$0xff] }
 0x14b   : >>> { %v976_v26 = vmul.f32 %v3130_v59, %v944_v47  ;;  %v977_v54 = vmul.f32 %v3130_v59, %v945_v43  ;;  %v978_v4 = vmul.f32 %v3130_v59, %v946_v49  ;;  %v979_v31 = vadd.f32 %v971_v2, %v923_v33  ;;  %v990_v28 = vld [vmem:[%s2830_s3 + $0x2e] sm:$0xff]  ;;  %v991_v59 = vld [vmem:[%s2830_s3 + $0x46] sm:$0xff] }
 0x14c   : >>> { %v980_v45 = vadd.f32 %v972_v63, %v924_v10  ;;  %v981_v42 = vadd.f32 %v973_v7, %v925_v15  ;;  %v982_v35 = vadd.f32 %v974_v40, %v926_v0  ;;  %v983_v1 = vadd.f32 %v975_v39, %v927_v36  ;;  %v992_v16 = vld [vmem:[%s2830_s3 + $0x4e] sm:$0xff]  ;;  %v993_v38 = vld [vmem:[%s2830_s3 + $0x66] sm:$0xff] }
 0x14d   : >>> { %v984_v29 = vadd.f32 %v976_v26, %v928_v37  ;;  %v985_v14 = vadd.f32 %v977_v54, %v929_v23  ;;  %v986_v57 = vadd.f32 %v978_v4, %v930_v48  ;;  %v994_v33 = vld [vmem:[%s2830_s3 + $0x6e] sm:$0xff]  ;;  %v3651_v10 = vsub.s32 6, %v2818_v18  ;;  %v997_v40 = vld [vmem:[%s2892_s30 + $0x26] sm:$0xff] }
 0x14e   : >>> { %v3653_v37 = vsub.s32 7, %v2818_v18  ;;  %v3226_v47 = vmul.f32 %v3136_v8, %v2834_v22  ;;  %v3229_v43 = vmul.f32 %v3136_v8, %v1099_v30  ;;  %v3233_v49 = vmul.f32 %v3136_v8, %v2847_v27  ;;  %v995_v18 = vld [vmem:[%s2892_s30 + $0x6] sm:$0xff]  ;;  %v998_v39 = vld [vmem:[%s2892_s30 + $0x2e] sm:$0xff] }
 0x14f   : >>> { %v1006_v15 = vrot.slane %v2823_v19, %v3651_v10  ;;  %v3652_v0 = vmov %v3651_v10  ;;  %v999_v26 = vld [vmem:[%s2892_s30 + $0x46] sm:$0xff]  ;;  %v1000_v27 = vld [vmem:[%s2892_s30 + $0x4e] sm:$0xff] }
 0x150   : >>> { %v1026_v36 = vrot.slane %v2828_v20, %v3652_v0  ;;  %v3217_v23 = vrot.slane %v2823_v19, %v3653_v37  ;;  %v3654_v48 = vmov %v3653_v37  ;;  %v3236_v19 = vmul.f32 %v3136_v8, %v1100_v5  ;;  %v1001_v0 = vld [vmem:[%s2892_s30 + $0x66] sm:$0xff]  ;;  %v1002_v5 = vld [vmem:[%s2892_s30 + $0x6e] sm:$0xff] }
 0x151   : >>> { %v3222_v13 = vrot.slane %v2828_v20, %v3654_v48  ;;  %v996_v20 = vld [vmem:[%s2892_s30 + $0xe] sm:$0xff]  ;;  %v1007_v2 = vmul.f32 %v1006_v15, %v987_v11  ;;  %v1008_v63 = vmul.f32 %v1006_v15, %v988_v3  ;;  %v1009_v7 = vmul.f32 %v1006_v15, %v989_v46 }
 0x152   : >>> { %v1010_v22 = vmul.f32 %v1006_v15, %v990_v28  ;;  %v1011_v54 = vmul.f32 %v1006_v15, %v991_v59  ;;  %v1012_v4 = vmul.f32 %v1006_v15, %v992_v16  ;;  %v1013_v30 = vmul.f32 %v1006_v15, %v993_v38 }
 0x153   : >>> { %v1014_v10 = vmul.f32 %v1006_v15, %v994_v33  ;;  %v1015_v37 = vadd.f32 %v1007_v2, %v959_v51  ;;  %v1016_v48 = vadd.f32 %v1008_v63, %v960_v12  ;;  %v1017_v62 = vadd.f32 %v1009_v7, %v961_v61  ;;  %v1043_v15 = vld [vmem:[%s2830_s3 + $0x7] sm:$0xff]  ;;  %v1046_v2 = vld [vmem:[%s2830_s3 + $0x2f] sm:$0xff] }
 0x154   : >>> { %v1018_v11 = vadd.f32 %v1010_v22, %v962_v9  ;;  %v1019_v3 = vadd.f32 %v1011_v54, %v963_v60  ;;  %v1020_v46 = vadd.f32 %v1012_v4, %v964_v53  ;;  %v1021_v28 = vadd.f32 %v1013_v30, %v965_v52  ;;  %v1045_v60 = vld [vmem:[%s2830_s3 + $0x27] sm:$0xff]  ;;  %v1048_v63 = vld [vmem:[%s2830_s3 + $0x4f] sm:$0xff] }
 0x155   : >>> { %v1022_v6 = vadd.f32 %v1014_v10, %v966_v55  ;;  %v1027_v59 = vmul.f32 %v1026_v36, %v995_v18  ;;  %v1028_v16 = vmul.f32 %v1026_v36, %v996_v20  ;;  %v1029_v38 = vmul.f32 %v1026_v36, %v997_v40  ;;  %v1047_v53 = vld [vmem:[%s2830_s3 + $0x47] sm:$0xff]  ;;  %v1050_v22 = vld [vmem:[%s2830_s3 + $0x6f] sm:$0xff] }
 0x156   : >>> { %v1030_v33 = vmul.f32 %v1026_v36, %v998_v39  ;;  %v1031_v51 = vmul.f32 %v1026_v36, %v999_v26  ;;  %v1032_v12 = vmul.f32 %v1026_v36, %v1000_v27  ;;  %v1033_v61 = vmul.f32 %v1026_v36, %v1001_v0  ;;  %v1049_v7 = vld [vmem:[%s2830_s3 + $0x67] sm:$0xff]  ;;  %v1052_v4 = vld [vmem:[%s2892_s30 + $0xf] sm:$0xff] }
 0x157   : >>> { %v1034_v9 = vmul.f32 %v1026_v36, %v1002_v5  ;;  %v1035_v52 = vadd.f32 %v1027_v59, %v979_v31  ;;  %v1036_v55 = vadd.f32 %v1028_v16, %v980_v45  ;;  %v1037_v18 = vadd.f32 %v1029_v38, %v981_v42  ;;  %v1051_v54 = vld [vmem:[%s2892_s30 + $0x7] sm:$0xff]  ;;  %v1054_v10 = vld [vmem:[%s2892_s30 + $0x2f] sm:$0xff] }
 0x158   : >>> { %v1038_v20 = vadd.f32 %v1030_v33, %v982_v35  ;;  %v1039_v40 = vadd.f32 %v1031_v51, %v983_v1  ;;  %v1040_v39 = vadd.f32 %v1032_v12, %v984_v29  ;;  %v1041_v26 = vadd.f32 %v1033_v61, %v985_v14  ;;  %v1053_v30 = vld [vmem:[%s2892_s30 + $0x27] sm:$0xff]  ;;  %v1056_v0 = vld [vmem:[%s2892_s30 + $0x4f] sm:$0xff] }
 0x159   : >>> { %v1042_v36 = vadd.f32 %v1034_v9, %v986_v57  ;;  %v1063_v31 = vmul.f32 %v3217_v23, %v1043_v15  ;;  %v1064_v45 = vmul.f32 %v3217_v23, %v1044_v25  ;;  %v1065_v42 = vmul.f32 %v3217_v23, %v1045_v60  ;;  %v1055_v27 = vld [vmem:[%s2892_s30 + $0x47] sm:$0xff]  ;;  %v1058_v59 = vld [vmem:[%s2892_s30 + $0x6f] sm:$0xff] }
 0x15a   : >>> { %v1066_v35 = vmul.f32 %v3217_v23, %v1046_v2  ;;  %v1067_v1 = vmul.f32 %v3217_v23, %v1047_v53  ;;  %v1068_v29 = vmul.f32 %v3217_v23, %v1048_v63  ;;  %v1069_v14 = vmul.f32 %v3217_v23, %v1049_v7  ;;  %v1057_v5 = vld [vmem:[%s2892_s30 + $0x67] sm:$0xff] }
 0x15b   : >>> { %v1070_v57 = vmul.f32 %v3217_v23, %v1050_v22  ;;  %v1071_v16 = vadd.f32 %v1063_v31, %v1015_v37  ;;  %v1072_v25 = vadd.f32 %v1064_v45, %v1016_v48  ;;  %v1073_v38 = vadd.f32 %v1065_v42, %v1017_v62  ;;  %v1103_v31 = vld [vmem:[%s2892_s30 + $0x10] sm:$0xff] }
 0x15c   : >>> { %v1074_v33 = vadd.f32 %v1066_v35, %v1018_v11  ;;  %v1075_v15 = vadd.f32 %v1067_v1, %v1019_v3  ;;  %v1076_v51 = vadd.f32 %v1068_v29, %v1020_v46  ;;  %v1077_v12 = vadd.f32 %v1069_v14, %v1021_v28  ;;  %v1101_v3 = vld [vmem:[%s2830_s3 + $0x50] sm:$0xff] }
 0x15d   : >>> { %v1078_v61 = vadd.f32 %v1070_v57, %v1022_v6  ;;  %v1083_v9 = vmul.f32 %v3222_v13, %v1051_v54  ;;  %v1084_v60 = vmul.f32 %v3222_v13, %v1052_v4  ;;  %v1085_v2 = vmul.f32 %v3222_v13, %v1053_v30  ;;  %v1102_v6 = vld [vmem:[%s2830_s3 + $0x70] sm:$0xff] }
 0x15e   : >>> { %v1086_v23 = vmul.f32 %v3222_v13, %v1054_v10  ;;  %v1087_v37 = vmul.f32 %v3222_v13, %v1055_v27  ;;  %v1088_v48 = vmul.f32 %v3222_v13, %v1056_v0  ;;  %v1089_v62 = vmul.f32 %v3222_v13, %v1057_v5  ;;  %v1104_v45 = vld [vmem:[%s2892_s30 + $0x30] sm:$0xff] }
 0x15f   : >>> { %v1090_v11 = vmul.f32 %v3222_v13, %v1058_v59  ;;  %v1091_v46 = vadd.f32 %v1083_v9, %v1035_v52  ;;  %v1092_v28 = vadd.f32 %v1084_v60, %v1036_v55  ;;  %v1093_v53 = vadd.f32 %v1085_v2, %v1037_v18  ;;  %v1105_v52 = vld [vmem:[%s2892_s30 + $0x50] sm:$0xff] }
 0x160   : >>> { %v1094_v63 = vadd.f32 %v1086_v23, %v1038_v20  ;;  %v1095_v7 = vadd.f32 %v1087_v37, %v1039_v40  ;;  %v1096_v22 = vadd.f32 %v1088_v48, %v1040_v39  ;;  %v1097_v54 = vadd.f32 %v1089_v62, %v1041_v26  ;;  %v1106_v55 = vld [vmem:[%s2892_s30 + $0x70] sm:$0xff]  ;;  %v3658_v23 = vld [vmem:[#allocation23_spill] sm:$0xff]  ;;  %v3659_v62 = vld [vmem:[#allocation24_spill] sm:$0xff] }
 0x161   : >>> { %v1098_v4 = vadd.f32 %v1090_v11, %v1042_v36  ;;  %v1115_v42 = vmul.f32 %v3136_v8, %v2858_v32  ;;  %v1116_v35 = vmul.f32 %v3136_v8, %v1101_v3  ;;  %v1117_v13 = vmul.f32 %v3136_v8, %v2862_v34  ;;  %v3657_v60 = vld [vmem:[#allocation22_spill] sm:$0xff] }
 0x162   : >>> { %v1118_v30 = vmul.f32 %v3136_v8, %v1102_v6  ;;  %v1119_v18 = vadd.f32 %v3226_v47, %v1071_v16  ;;  %v1120_v20 = vadd.f32 %v3229_v43, %v1072_v25  ;;  %v1121_v40 = vadd.f32 %v3233_v49, %v1073_v38  ;;  %v1147_v16 = vld [vmem:[%s2830_s3 + $0x11] sm:$0xff] }
 0x163   : >>> { %v1122_v39 = vadd.f32 %v3236_v19, %v1074_v33  ;;  %v1123_v26 = vadd.f32 %v1115_v42, %v1075_v15  ;;  %v1124_v36 = vadd.f32 %v1116_v35, %v1076_v51  ;;  %v1125_v32 = vadd.f32 %v1117_v13, %v1077_v12  ;;  %v1148_v25 = vld [vmem:[%s2830_s3 + $0x31] sm:$0xff]  ;;  %v3656_v12 = vld [vmem:[#allocation21_spill] sm:$0xff] }
 0x164   : >>> { %v1126_v10 = vadd.f32 %v1118_v30, %v1078_v61  ;;  %v1131_v27 = vmul.f32 %v3140_v41, %v2896_v44  ;;  %v1132_v34 = vmul.f32 %v3140_v41, %v1103_v31  ;;  %v1133_v8 = vmul.f32 %v3140_v41, %v2902_v50  ;;  %v1150_v38 = vld [vmem:[%s2830_s3 + $0x71] sm:$0xff] }
 0x165   : >>> { %v1134_v47 = vmul.f32 %v3140_v41, %v1104_v45  ;;  %v1135_v43 = vmul.f32 %v3140_v41, %v2908_v56  ;;  %v1136_v49 = vmul.f32 %v3140_v41, %v1105_v52  ;;  %v1137_v19 = vmul.f32 %v3140_v41, %v2912_v58  ;;  %v1149_v56 = vld [vmem:[%s2830_s3 + $0x51] sm:$0xff] }
 0x166   : >>> { %v1138_v44 = vmul.f32 %v3140_v41, %v1106_v55  ;;  %v1139_v1 = vadd.f32 %v1131_v27, %v1091_v46  ;;  %v1140_v29 = vadd.f32 %v1132_v34, %v1092_v28  ;;  %v1141_v14 = vadd.f32 %v1133_v8, %v1093_v53  ;;  %v3655_v41 = vld [vmem:[#allocation20_spill] sm:$0xff]  ;;  %v1151_v6 = vld [vmem:[%s2892_s30 + $0x11] sm:$0xff]  ;;  %v3660_v28 = vld [vmem:[#allocation25_spill] sm:$0xff] }
 0x167   : >>> { %v1142_v57 = vadd.f32 %v1134_v47, %v1094_v63  ;;  %v1143_v0 = vadd.f32 %v1135_v43, %v1095_v7  ;;  %v1144_v50 = vadd.f32 %v1136_v49, %v1096_v22  ;;  %v1145_v5 = vadd.f32 %v1137_v19, %v1097_v54  ;;  %v1152_v46 = vld [vmem:[%s2892_s30 + $0x31] sm:$0xff]  ;;  %v3663_v8 = vld [vmem:[#allocation28_spill] sm:$0xff]  ;;  %v3664_v49 = vld [vmem:[#allocation29_spill] sm:$0xff] }
 0x168   : >>> { %v1146_v59 = vadd.f32 %v1138_v44, %v1098_v4  ;;  %v1158_v33 = vrot.slane %v3091_v17, %v2840_v24  ;;  %v1178_v58 = vrot.slane %v3100_v21, %v2840_v24  ;;  %v1206_v15 = vrot.slane %v3091_v17, %v3655_v41  ;;  %v3661_v7 = vld [vmem:[#allocation26_spill] sm:$0xff]  ;;  %v3662_v55 = vld [vmem:[#allocation27_spill] sm:$0xff] }
 0x169   : >>> { %v3318_v51 = vrot.slane %v3100_v21, %v3655_v41  ;;  %v3322_v61 = vrot.slane %v3091_v17, %v3656_v12  ;;  %v3326_v9 = vrot.slane %v3100_v21, %v3656_v12  ;;  %v3330_v24 = vrot.slane %v3091_v17, %v3657_v60  ;;  %v1153_v17 = vld [vmem:[%s2892_s30 + $0x51] sm:$0xff] }
 0x16a   : >>> { %v3334_v2 = vrot.slane %v3100_v21, %v3657_v60  ;;  %v1159_v37 = vmul.f32 %v1158_v33, %v3658_v23  ;;  %v1160_v48 = vmul.f32 %v1158_v33, %v1147_v16  ;;  %v1161_v11 = vmul.f32 %v1158_v33, %v3659_v62  ;;  %v1154_v4 = vld [vmem:[%s2892_s30 + $0x71] sm:$0xff] }
 0x16b   : >>> { %v1162_v3 = vmul.f32 %v1158_v33, %v1148_v25  ;;  %v1163_v53 = vmul.f32 %v1158_v33, %v3660_v28  ;;  %v1164_v63 = vmul.f32 %v1158_v33, %v1149_v56  ;;  %v1165_v22 = vmul.f32 %v1158_v33, %v3661_v7  ;;  %v3665_v44 = vld [vmem:[#allocation30_spill] sm:$0xff]  ;;  %v3666_v60 = vld [vmem:[#allocation31_spill] sm:$0xff] }
 0x16c   : >>> { %v1166_v54 = vmul.f32 %v1158_v33, %v1150_v38  ;;  %v1167_v31 = vadd.f32 %v1159_v37, %v1119_v18  ;;  %v1168_v21 = vadd.f32 %v1160_v48, %v1120_v20  ;;  %v1169_v45 = vadd.f32 %v1161_v11, %v1121_v40  ;;  %v1195_v40 = vld [vmem:[%s2830_s3 + $0x12] sm:$0xff] }
 0x16d   : >>> { %v1170_v42 = vadd.f32 %v1162_v3, %v1122_v39  ;;  %v1171_v35 = vadd.f32 %v1163_v53, %v1123_v26  ;;  %v1172_v13 = vadd.f32 %v1164_v63, %v1124_v36  ;;  %v1173_v30 = vadd.f32 %v1165_v22, %v1125_v32  ;;  %v1196_v39 = vld [vmem:[%s2830_s3 + $0x32] sm:$0xff] }
 0x16e   : >>> { %v1174_v52 = vadd.f32 %v1166_v54, %v1126_v10  ;;  %v1179_v27 = vmul.f32 %v1178_v58, %v3662_v55  ;;  %v1180_v34 = vmul.f32 %v1178_v58, %v1151_v6  ;;  %v1181_v47 = vmul.f32 %v1178_v58, %v3663_v8  ;;  %v1197_v25 = vld [vmem:[%s2830_s3 + $0x52] sm:$0xff] }
 0x16f   : >>> { %v1182_v43 = vmul.f32 %v1178_v58, %v1152_v46  ;;  %v1183_v19 = vmul.f32 %v1178_v58, %v3664_v49  ;;  %v1184_v18 = vmul.f32 %v1178_v58, %v1153_v17  ;;  %v1185_v20 = vmul.f32 %v1178_v58, %v3665_v44  ;;  %v1198_v56 = vld [vmem:[%s2830_s3 + $0x72] sm:$0xff] }
 0x170   : >>> { %v1186_v16 = vmul.f32 %v1178_v58, %v1154_v4  ;;  %v1187_v26 = vadd.f32 %v1179_v27, %v1139_v1  ;;  %v1188_v36 = vadd.f32 %v1180_v34, %v1140_v29  ;;  %v1189_v32 = vadd.f32 %v1181_v47, %v1141_v14  ;;  %v3667_v58 = vld [vmem:[#allocation32_spill] sm:$0xff]  ;;  %v1199_v11 = vld [vmem:[%s2892_s30 + $0x12] sm:$0xff]  ;;  %v3668_v1 = vld [vmem:[#allocation33_spill] sm:$0xff] }
 0x171   : >>> { %v1190_v10 = vadd.f32 %v1182_v43, %v1142_v57  ;;  %v1191_v38 = vadd.f32 %v1183_v19, %v1143_v0  ;;  %v1192_v33 = vadd.f32 %v1184_v18, %v1144_v50  ;;  %v1193_v41 = vadd.f32 %v1185_v20, %v1145_v5  ;;  %v1200_v3 = vld [vmem:[%s2892_s30 + $0x32] sm:$0xff] }
 0x172   : >>> { %v1194_v12 = vadd.f32 %v1186_v16, %v1146_v59  ;;  %v1207_v23 = vmul.f32 %v1206_v15, %v3666_v60  ;;  %v1208_v37 = vmul.f32 %v1206_v15, %v1195_v40  ;;  %v1209_v48 = vmul.f32 %v1206_v15, %v3667_v58  ;;  %v3669_v57 = vld [vmem:[#allocation34_spill] sm:$0xff]  ;;  %v3670_v17 = vld [vmem:[#allocation35_spill] sm:$0xff] }
 0x173   : >>> { %v1210_v62 = vmul.f32 %v1206_v15, %v1196_v39  ;;  %v1211_v29 = vmul.f32 %v1206_v15, %v3668_v1  ;;  %v1212_v14 = vmul.f32 %v1206_v15, %v1197_v25  ;;  %v1213_v6 = vmul.f32 %v1206_v15, %v3669_v57  ;;  %v1201_v28 = vld [vmem:[%s2892_s30 + $0x52] sm:$0xff] }
 0x174   : >>> { %v1214_v46 = vmul.f32 %v1206_v15, %v1198_v56  ;;  %v1202_v53 = vld [vmem:[%s2892_s30 + $0x72] sm:$0xff]  ;;  %v1215_v0 = vadd.f32 %v1207_v23, %v1167_v31  ;;  %v1216_v50 = vadd.f32 %v1208_v37, %v1168_v21  ;;  %v1217_v5 = vadd.f32 %v1209_v48, %v1169_v45  ;;  %v3671_v15 = vld [vmem:[#allocation36_spill] sm:$0xff]  ;;  %v3672_v21 = vld [vmem:[#allocation37_spill] sm:$0xff] }
 0x175   : >>> { %v1218_v59 = vadd.f32 %v1210_v62, %v1170_v42  ;;  %v1219_v63 = vadd.f32 %v1211_v29, %v1171_v35  ;;  %v1220_v7 = vadd.f32 %v1212_v14, %v1172_v13  ;;  %v1221_v22 = vadd.f32 %v1213_v6, %v1173_v30  ;;  %v3673_v35 = vld [vmem:[#allocation38_spill] sm:$0xff]  ;;  %v3674_v39 = vld [vmem:[#allocation39_spill] sm:$0xff]  ;;  %v3675_v56 = vld [vmem:[#allocation40_spill] sm:$0xff] }
 0x176   : >>> { %v1222_v54 = vadd.f32 %v1214_v46, %v1174_v52  ;;  %v1227_v4 = vmul.f32 %v3318_v51, %v3670_v17  ;;  %v1228_v55 = vmul.f32 %v3318_v51, %v1199_v11  ;;  %v1229_v27 = vmul.f32 %v3318_v51, %v3671_v15  ;;  %v1243_v52 = vld [vmem:[%s2830_s3 + $0x13] sm:$0xff] }
 0x177   : >>> { %v1230_v31 = vmul.f32 %v3318_v51, %v1200_v3  ;;  %v1231_v45 = vmul.f32 %v3318_v51, %v3672_v21  ;;  %v1232_v42 = vmul.f32 %v3318_v51, %v1201_v28  ;;  %v1233_v13 = vmul.f32 %v3318_v51, %v3673_v35  ;;  %v1244_v34 = vld [vmem:[%s2830_s3 + $0x33] sm:$0xff] }
 0x178   : >>> { %v1234_v30 = vmul.f32 %v3318_v51, %v1202_v53  ;;  %v1235_v8 = vadd.f32 %v1227_v4, %v1187_v26  ;;  %v1236_v47 = vadd.f32 %v1228_v55, %v1188_v36  ;;  %v1237_v43 = vadd.f32 %v1229_v27, %v1189_v32  ;;  %v1245_v19 = vld [vmem:[%s2830_s3 + $0x53] sm:$0xff] }
 0x179   : >>> { %v1238_v49 = vadd.f32 %v1230_v31, %v1190_v10  ;;  %v1246_v18 = vld [vmem:[%s2830_s3 + $0x73] sm:$0xff]  ;;  %v1239_v44 = vadd.f32 %v1231_v45, %v1191_v38  ;;  %v1240_v20 = vadd.f32 %v1232_v42, %v1192_v33  ;;  %v1241_v16 = vadd.f32 %v1233_v13, %v1193_v41  ;;  %v3676_v10 = vld [vmem:[#allocation41_spill] sm:$0xff] }
 0x17a   : >>> { %v1242_v40 = vadd.f32 %v1234_v30, %v1194_v12  ;;  %v1255_v25 = vmul.f32 %v3322_v61, %v3674_v39  ;;  %v1256_v51 = vmul.f32 %v3322_v61, %v1243_v52  ;;  %v1257_v60 = vmul.f32 %v3322_v61, %v3675_v56  ;;  %v1247_v36 = vld [vmem:[%s2892_s30 + $0x13] sm:$0xff] }
 0x17b   : >>> { %v1258_v26 = vmul.f32 %v3322_v61, %v1244_v34  ;;  %v1248_v32 = vld [vmem:[%s2892_s30 + $0x33] sm:$0xff]  ;;  %v1259_v23 = vmul.f32 %v3322_v61, %v3676_v10  ;;  %v1260_v38 = vmul.f32 %v3322_v61, %v1245_v19  ;;  %v1262_v12 = vmul.f32 %v3322_v61, %v1246_v18  ;;  %v3683_v34 = vld [vmem:[#allocation48_spill] sm:$0xff] }
 0x17c   : >>> { %v3677_v33 = vld [vmem:[#allocation42_spill] sm:$0xff]  ;;  %v1263_v48 = vadd.f32 %v1255_v25, %v1215_v0  ;;  %v1264_v62 = vadd.f32 %v1256_v51, %v1216_v50  ;;  %v1265_v11 = vadd.f32 %v1257_v60, %v1217_v5  ;;  %v3678_v6 = vld [vmem:[#allocation43_spill] sm:$0xff]  ;;  %v1276_v28 = vmul.f32 %v3326_v9, %v1247_v36  ;;  %v3680_v50 = vld [vmem:[#allocation45_spill] sm:$0xff] }
 0x17d   : >>> { %v1261_v41 = vmul.f32 %v3322_v61, %v3677_v33  ;;  %v1249_v37 = vld [vmem:[%s2892_s30 + $0x53] sm:$0xff]  ;;  %v1266_v3 = vadd.f32 %v1258_v26, %v1218_v59  ;;  %v1267_v1 = vadd.f32 %v1259_v23, %v1219_v63  ;;  %v1268_v29 = vadd.f32 %v1260_v38, %v1220_v7  ;;  %v3679_v61 = vld [vmem:[#allocation44_spill] sm:$0xff] }
 0x17e   : >>> { %v1250_v58 = vld [vmem:[%s2892_s30 + $0x73] sm:$0xff]  ;;  %v1270_v57 = vadd.f32 %v1262_v12, %v1222_v54  ;;  %v1275_v46 = vmul.f32 %v3326_v9, %v3678_v6  ;;  %v1277_v53 = vmul.f32 %v3326_v9, %v3679_v61  ;;  %v1278_v0 = vmul.f32 %v3326_v9, %v1248_v32  ;;  %v3687_v12 = vld [vmem:[#allocation52_spill] sm:$0xff] }
 0x17f   : >>> { %v1269_v14 = vadd.f32 %v1261_v41, %v1221_v22  ;;  %v1279_v5 = vmul.f32 %v3326_v9, %v3680_v50  ;;  %v1280_v59 = vmul.f32 %v3326_v9, %v1249_v37  ;;  %v3681_v63 = vld [vmem:[#allocation46_spill] sm:$0xff]  ;;  %v1282_v22 = vmul.f32 %v3326_v9, %v1250_v58  ;;  %v3682_v30 = vld [vmem:[#allocation47_spill] sm:$0xff]  ;;  %v3688_v58 = vld [vmem:[#allocation53_spill] sm:$0xff] }
 0x180   : >>> { %v1281_v7 = vmul.f32 %v3326_v9, %v3681_v63  ;;  %v1291_v54 = vld [vmem:[%s2830_s3 + $0x14] sm:$0xff]  ;;  %v1283_v4 = vadd.f32 %v1275_v46, %v1235_v8  ;;  %v1284_v55 = vadd.f32 %v1276_v28, %v1236_v47  ;;  %v1285_v15 = vadd.f32 %v1277_v53, %v1237_v43 }
 0x181   : >>> { %v1292_v17 = vld [vmem:[%s2830_s3 + $0x34] sm:$0xff]  ;;  %v1286_v27 = vadd.f32 %v1278_v0, %v1238_v49  ;;  %v1287_v45 = vadd.f32 %v1279_v5, %v1239_v44  ;;  %v1288_v42 = vadd.f32 %v1280_v59, %v1240_v20  ;;  %v1290_v13 = vadd.f32 %v1282_v22, %v1242_v40  ;;  %v3684_v49 = vld [vmem:[#allocation49_spill] sm:$0xff] }
 0x182   : >>> { %v1293_v31 = vld [vmem:[%s2830_s3 + $0x54] sm:$0xff]  ;;  %v1289_v35 = vadd.f32 %v1281_v7, %v1241_v16  ;;  %v1303_v52 = vmul.f32 %v3330_v24, %v3682_v30  ;;  %v1304_v9 = vmul.f32 %v3330_v24, %v1291_v54  ;;  %v1305_v19 = vmul.f32 %v3330_v24, %v3683_v34 }
 0x183   : >>> { %v1294_v21 = vld [vmem:[%s2830_s3 + $0x74] sm:$0xff]  ;;  %v1306_v8 = vmul.f32 %v3330_v24, %v1292_v17  ;;  %v1307_v18 = vmul.f32 %v3330_v24, %v3684_v49  ;;  %v1308_v44 = vmul.f32 %v3330_v24, %v1293_v31  ;;  %v1325_v37 = vmul.f32 %v3334_v2, %v3687_v12 }
 0x184   : >>> { %v1295_v47 = vld [vmem:[%s2892_s30 + $0x14] sm:$0xff]  ;;  %v1310_v40 = vmul.f32 %v3330_v24, %v1294_v21  ;;  %v1311_v51 = vadd.f32 %v1303_v52, %v1263_v48   ;;  %v1312_v56 = vadd.f32 %v1304_v9, %v1264_v62   ;;  %v1313_v60 = vadd.f32 %v1305_v19, %v1265_v11  }
 0x185   : >>> { %v1296_v43 = vld [vmem:[%s2892_s30 + $0x34] sm:$0xff]  ;;  %v1314_v26 = vadd.f32 %v1306_v8, %v1266_v3   ;;  %v1315_v36 = vadd.f32 %v1307_v18, %v1267_v1   ;;  %v1316_v32 = vadd.f32 %v1308_v44, %v1268_v29   ;;  %v1324_v41 = vmul.f32 %v3334_v2, %v1295_v47 }
 0x186   : >>> { %v3685_v20 = vld [vmem:[#allocation50_spill] sm:$0xff]  ;;  %v1318_v38 = vadd.f32 %v1310_v40, %v1270_v57   ;;  %v3686_v10 = vld [vmem:[#allocation51_spill] sm:$0xff]  ;;  %v1327_v48 = vmul.f32 %v3334_v2, %v3688_v58  ;;  %v1333_v46 = vadd.f32 %v1325_v37, %v1285_v15   ;;  %v3705_v15 = vmov %v1312_v56 }
 0x187   : >>> { %v1309_v16 = vmul.f32 %v3330_v24, %v3685_v20  ;;  %v1297_v39 = vld [vmem:[%s2892_s30 + $0x54] sm:$0xff]  ;;  %v1323_v33 = vmul.f32 %v3334_v2, %v3686_v10  ;;  %v1326_v24 = vmul.f32 %v3334_v2, %v1296_v43  ;;  %v1332_v57 = vadd.f32 %v1324_v41, %v1284_v55  }
 0x188   : >>> { %v1298_v25 = vld [vmem:[%s2892_s30 + $0x74] sm:$0xff]  ;;  %v1328_v62 = vmul.f32 %v3334_v2, %v1297_v39  ;;  %v1335_v61 = vadd.f32 %v1327_v48, %v1287_v45   ;;  %v3696_v6 = vmov %v1333_v46  ;;  %v3699_v9 = vmov %v1318_v38  ;;  %622 = sbr.rel (!%p3437_p2) target bundleno = 275 (0x113), region = 127 }
 0x189   : >>> { %v1317_v23 = vadd.f32 %v1309_v16, %v1269_v14   ;;  %v3689_v11 = vld [vmem:[#allocation54_spill] sm:$0xff]  ;;  %v1330_v1 = vmul.f32 %v3334_v2, %v1298_v25  ;;  %v1331_v29 = vadd.f32 %v1323_v33, %v1283_v4   ;;  %v1334_v28 = vadd.f32 %v1326_v24, %v1286_v27  }
 0x18a   : >>> { %v1329_v3 = vmul.f32 %v3334_v2, %v3689_v11  ;;  %v1336_v53 = vadd.f32 %v1328_v62, %v1288_v42   ;;  %v3694_v4 = vmov %v1335_v61  ;;  %v3697_v7 = vmov %v1332_v57 }
 0x18b   : >>> { %v1338_v50 = vadd.f32 %v1330_v1, %v1290_v13   ;;  %v3695_v5 = vmov %v1334_v28  ;;  %v3698_v8 = vmov %v1331_v29  ;;  %v3700_v10 = vmov %v1317_v23 }
 0x18c   : >>> { %v1337_v0 = vadd.f32 %v1329_v3, %v1289_v35   ;;  %v3693_v3 = vmov %v1336_v53  ;;  %v3701_v11 = vmov %v1316_v32  ;;  %v3702_v12 = vmov %v1315_v36 }
 0x18d   : >>> { %v3691_v1 = vmov %v1338_v50  ;;  %v3703_v13 = vmov %v1314_v26  ;;  %v3704_v14 = vmov %v1313_v60  ;;  %v3706_v16 = vmov %v1311_v51 }
 0x18e   : >>> { %v3692_v2 = vmov %v1337_v0  ;;  %v1339_v59 = vmul.f32 (%p3437_p2), 11.313708, %v1331_v29  ;;  %v1340_v63 = vmul.f32 (%p3437_p2), 11.313708, %v1332_v57  ;;  %v1341_v22 = vmul.f32 (%p3437_p2), 11.313708, %v1333_v46 }
 0x18f   : >> { %v1342_v54 = vmul.f32 11.313708, %v1334_v28  ;;  %v1343_v17 = vmul.f32 11.313708, %v1335_v61  ;;  %v1344_v31 = vmul.f32 11.313708, %v1336_v53 }
 0x190   : >> { %v1347_v55 = vmul.f32 %v1339_v59, %v1311_v51  ;;  %v1348_v27 = vmul.f32 %v1340_v63, %v1312_v56  ;;  %v1345_v21 = vmul.f32 11.313708, %v1337_v0  ;;  %v1349_v45 = vmul.f32 %v1341_v22, %v1313_v60  ;;  %615 = sbr.rel (!%p613_p6) target bundleno = 271 (0x10f), region = 138  ;;  %s1615_s12 = sshll.u32 (%p613_p6), %s2127_s18, 12 }
 0x191   : >> { %v1350_v42 = vmul.f32 %v1342_v54, %v1314_v26  ;;  %v1351_v35 = vmul.f32 %v1343_v17, %v1315_v36  ;;  %v1346_v30 = vmul.f32 11.313708, %v1338_v50  ;;  %v1352_v2 = vmul.f32 %v1344_v31, %v1316_v32  ;;  %s3487_s8 = scalar_lea.hbm (%p613_p6), %s3544_s4, %s1615_s12  ;;  %s1380_s2 = sshll.u32 (%p613_p6), %s318_s21, 4  ;;  %s3491_s2 = int_to_ptr.vmem [resolvable:$true] %s1380_s2 }
 0x192   : >> { %1357 = vst [vmem:[%s1356_s0] sm:$0xff] %v1347_v55  ;;  %1358 = vst [vmem:[%s1356_s0 + $0x8] sm:$0xff] %v1348_v27  ;;  %v1353_v14 = vmul.f32 %v1345_v21, %v1317_v23  ;;  %s1366_s13 = scalar_lea.sflag (%p613_p6), [#allocation6], %s2478_s19  ;;  %s1969_s23 = scalar_lea.vmem (%p613_p6), %s3491_s2, 4096 }
 0x193   : >> { %1359 = vst [vmem:[%s1356_s0 + $0x10] sm:$0xff] %v1349_v45  ;;  %1360 = vst [vmem:[%s1356_s0 + $0x18] sm:$0xff] %v1350_v42  ;;  %v1354_v6 = vmul.f32 %v1346_v30, %v1318_v38  ;;  %p1970_p10 = scmp.ne.s32.totalorder (%p613_p6), %s3491_s2, %s1969_s23  ;;  %p3707_p3 = scmp.ne.s32.totalorder (%p613_p6), %s3604_s26, 0 }
 0x194   : >> { %1361 = vst [vmem:[%s1356_s0 + $0x20] sm:$0xff] %v1351_v35  ;;  %1362 = vst [vmem:[%s1356_s0 + $0x28] sm:$0xff] %v1352_v2  ;;  %s2216_s22 = smov (%p613_p6), [#allocation12]  }
 0x195   : >> { %1363 = vst [vmem:[%s1356_s0 + $0x30] sm:$0xff] %v1353_v14  ;;  %1364 = vst [vmem:[%s1356_s0 + $0x38] sm:$0xff] %v1354_v6  ;;  %p1971_p4 = pnand (%p613_p6), %p1970_p10, %p3707_p3  ;;  %s1973_s18 = sshll.u32 (%p613_p6), %s2216_s22, 4  ;;  %s1974_s18 = int_to_ptr.vmem [resolvable:$false] %s1973_s18 }
 0x196   : > { %s1975_s29 = scalar_lea.vmem (%p613_p6), %s1974_s18, 8192  ;;  %p1976_p5 = scmp.lt.s32.totalorder (%p613_p6), %s3491_s2, %s1974_s18 }
 0x197   : > { %p1972_p9 = pneg %p1971_p4  ;;  %p1977_p7 = scmp.lt.s32.totalorder %s1975_s29, %s1969_s23 }
 0x199   : > { %p1978_p12 = por %p1977_p7, %p1976_p5 }
 0x19b   : > { %p1979_p1 = pnand %p1978_p12, %p1972_p9 }
 0x19d   : > { %1982 = shalt.err (!%p1979_p1)
}
 0x19e   : > { %s1983_s9 = scalar_lea.hbm %s3487_s8, 4096  ;;  %s1987_s5 = scalar_lea.hbm %s3544_s4, 8192 }
 0x19f   : > { %p1984_p8 = scmp.ne.s32.totalorder %s3487_s8, %s1983_s9  ;;  %p1988_p0 = scmp.lt.u32.totalorder %s3487_s8, %s3544_s4 }
 0x1a0   : > { %p1989_p2 = scmp.lt.u32.totalorder %s1987_s5, %s1983_s9  ;;  %p1991_p10 = scmp.lt.u32.totalorder %s1983_s9, %s3487_s8 }
 0x1a1   : > { %p1985_p11 = pnand %p1984_p8, %p3707_p3 }
 0x1a2   : > { %p1990_p6 = por %p1989_p2, %p1988_p0 }
 0x1a3   : > { %p1986_p13 = pneg %p1985_p11 }
 0x1a4   : > { %p1992_p4 = por %p1991_p10, %p1990_p6 }
 0x1a6   : > { %p1993_p9 = pnand %p1992_p4, %p1986_p13 }
 0x1a8   : > { %1996 = shalt.err (!%p1993_p9)
}
 0x1a9   : > { %s2217_s3 = smov 128   ;;  %s2218_s30 = smov 8  }
 0x1aa   : > { %1628 = dma.vmem_to_hbm [thread:$0]  (%p3707_p3), %s3491_s2, 4096, %s3487_s8, %s1366_s13, %s2217_s3, %s2217_s3, %s2218_s30  }
 0x1ab PF: > { %s1395_s10 = sand.u32 1, %s2115_s15   ;;  %p3708_p5 = scmp.ne.s32.totalorder %s3597_s24, 0 }
 0x1ac   : > { %p3709_p7 = scmp.ge.s32.totalorder %s2135_s20, 2  ;;  %s1396_s11 = scalar_lea.sflag [#allocation6], %s1395_s10 }
 0x1ae   : > { %p1645_p12 = pnand %p3709_p7, %p3708_p5 }
 0x1b0   : > { %2110 = dma.done.wait (!%p1645_p12), %s1396_s11, 4096  }
 0x1b1   : > { %2112 = vsyncadd (!%p1645_p12), %s1396_s11, 4294963200  ;;  %s24_s20 = sadd.s32 1, %s2135_s20   ;;  %s3710_s18 = sld [smem:[#allocation18_spill]] }
 0x1b2   : > { %p21_p1 = scmp.ge.s32.totalorder %s24_s20, 4   ;;  %s3711_s19 = sld [smem:[#allocation19_spill]] }
 0x1b3   : > { %s3712_s15 = smov %s2119_s16  ;;  %s3713_s16 = smov %s2123_s17 }
 0x1b4   : > { %s3714_s17 = smov %s2390_s7  ;;  %23 = sbr.rel (!%p21_p1) target bundleno = 13 (0xd), region = 149 }
 0x1bb   :  { %1401 = vsyncpa [#allocation5], 1 }
 0x1bc   :  { %1403 = vsyncpa [#allocation5 + $0x1], 1 }
 0x1bd   :  { %1404 = vsyncpa [#allocation8], 1 }
 0x1be   :  { %1406 = vsyncpa [#allocation8 + $0x1], 1 }
 0x1bf   :  { %1407 = vsyncpa [#allocation11], 1 }
 0x1c0   :  { %1408 = vsyncpa [#allocation6], 1 }
 0x1c1   :  { %1410 = vsyncpa [#allocation6 + $0x1], 1 }

</bundles_post_ra>
